<compile_context>
chip_gen: v5e
topology: v5e:2x2
jax: 0.10.0
libtpu: 0.0.40
codegen_flags: <defaults>
</compile_context>

<pallas_src>
import numpy as np
import jax
import jax.numpy as jnp
from jax.experimental import pallas as pl
from jax.experimental.pallas import tpu as pltpu

IN_DIM = 103                                  # attention weight is (103, 103)
DIMS = [103, 206, 412, 206, 103, 9]           # logical layer widths
PDIMS = [128, 256, 512, 256, 128, 128]        # lane-padded layer widths
TILE_CANDIDATES = (1024, 512, 256, 128)       # row-tile sizes (multiples of 128)


def net1_kernel(x_ref,
                w1_ref, b1_ref, w2_ref, b2_ref, w3_ref, b3_ref,
                w4_ref, b4_ref, w5_ref, b5_ref, o_ref):
    h = x_ref[...]                                           # (tile_r, 128) bf16
    # conv1..conv4 (1x1 convs == per-row linear) + ReLU, f32 accumulation.
    for w_ref, b_ref in ((w1_ref, b1_ref), (w2_ref, b2_ref),
                         (w3_ref, b3_ref), (w4_ref, b4_ref)):
        acc = jnp.dot(h, w_ref[...], preferred_element_type=jnp.float32)
        h = jnp.maximum(acc + b_ref[...], 0.0).astype(jnp.bfloat16)
    # conv5 + sigmoid (exp -> EUP, approximate reciprocal -> EUP).
    z = jnp.dot(h, w5_ref[...], preferred_element_type=jnp.float32) + b5_ref[...]
    o_ref[...] = pl.reciprocal(1.0 + jnp.exp(-z), approx=True)


def init_params(key):
    """Deterministic synthetic parameters matching the PyTorch shapes."""
    keys = jax.random.split(key, 11)
    params = {}
    # Attention weight: uniform(-1, 1), shape (103, 103).
    params["wa"] = jax.random.uniform(keys[0], (IN_DIM, IN_DIM),
                                      jnp.float32, -1.0, 1.0)
    # Conv1d weights (out, in, 1) -> stored as (in, out); biases as (1, out).
    for li in range(5):
        cin, cout = DIMS[li], DIMS[li + 1]
        bound = 1.0 / np.sqrt(cin)            # PyTorch-style uniform bound
        params[f"w{li + 1}"] = jax.random.uniform(
            keys[1 + 2 * li], (cin, cout), jnp.float32, -bound, bound)
        params[f"b{li + 1}"] = jax.random.uniform(
            keys[2 + 2 * li], (1, cout), jnp.float32, -bound, bound)
    return params


def pack_params(params):
    """Fold attention into conv1, zero-pad to PDIMS, cast weights to bf16."""
    w_list = [params["wa"] @ params["w1"],    # (103, 206): fold is exact (linear)
              params["w2"], params["w3"], params["w4"], params["w5"]]
    b_list = [params[f"b{i}"] for i in range(1, 6)]
    args = []
    for li in range(5):
        w, b = w_list[li], b_list[li]
        pin, pout = PDIMS[li], PDIMS[li + 1]
        wp = jnp.zeros((pin, pout), jnp.float32).at[:w.shape[0], :w.shape[1]].set(w)
        bp = jnp.zeros((1, pout), jnp.float32).at[:, :b.shape[1]].set(b)
        args.append(wp.astype(jnp.bfloat16))  # weight: bf16
        args.append(bp)                       # bias: f32
    return args


def _round_up(n, m):
    return ((n + m - 1) // m) * m


def _choose_row_tiling(n_rows):
    """Pad rows to a multiple of 128 and pick the largest tile that divides it."""
    r_pad = _round_up(max(n_rows, 1), 128)
    for cand in TILE_CANDIDATES:
        if r_pad % cand == 0:
            return r_pad, cand
    return r_pad, 128                          # unreachable (128 always divides)


def net1_forward(x, params):
    # Glue (pure reshape/transpose/pad) done in plain JAX.
    x2 = x.reshape(x.shape[0], -1).T.astype(jnp.float32)     # (R, 103)
    R = x2.shape[0]
    r_pad, tile_r = _choose_row_tiling(R)
    num_tiles = r_pad // tile_r

    # Zero-pad rows to a tile multiple and lanes to 128; cast to bf16.
    xp = jnp.zeros((r_pad, PDIMS[0]), jnp.bfloat16)
    xp = xp.at[:R, :IN_DIM].set(x2.astype(jnp.bfloat16))

    weight_args = pack_params(params)

    x_spec = pl.BlockSpec((tile_r, PDIMS[0]), lambda i: (i, 0))
    param_specs = []
    for li in range(5):
        pin, pout = PDIMS[li], PDIMS[li + 1]
        # Constant index_maps -> weights/biases fetched once, stay VMEM-resident.
        param_specs.append(pl.BlockSpec((pin, pout), lambda i: (0, 0)))  # weight
        param_specs.append(pl.BlockSpec((1, pout), lambda i: (0, 0)))    # bias
    out_spec = pl.BlockSpec((tile_r, PDIMS[5]), lambda i: (i, 0))

    out = pl.pallas_call(
        net1_kernel,
        out_shape=jax.ShapeDtypeStruct((r_pad, PDIMS[5]), jnp.float32),
        grid=(num_tiles,),
        in_specs=[x_spec] + param_specs,
        out_specs=out_spec,
        compiler_params=pltpu.CompilerParams(
            dimension_semantics=("parallel",)),
    )(xp, *weight_args)

    return out[:R, :DIMS[-1]]                                # (R, 9)


def net1_reference(x, params):
    """Plain-JAX f32 reference (unfolded, unpadded) for validation."""
    h = x.reshape(x.shape[0], -1).T.astype(jnp.float32) @ params["wa"]
    for li in range(1, 5):
        h = jnp.maximum(h @ params[f"w{li}"] + params[f"b{li}"], 0.0)
    z = h @ params["w5"] + params["b5"]
    return jax.nn.sigmoid(z)


if __name__ == "__main__":
    key = jax.random.PRNGKey(0)
    pkey, xkey = jax.random.split(key)
    params = init_params(pkey)

    # Input: first dim must be 103 (attention dim); small trailing dim R=8.
    x = jax.random.normal(xkey, (IN_DIM, 8), jnp.float32)

    out = jax.block_until_ready(net1_forward(x, params))
    ref = net1_reference(x, params)

    assert out.shape == (8, 9), out.shape
    # bf16 weights/activations (f32 accumulation) -> loosened tolerance.
    np.testing.assert_allclose(np.asarray(out), np.asarray(ref),
                               rtol=3e-2, atol=3e-2)
    print("KERNEL_OK")
</pallas_src>

<mosaic_0001>
module attributes {stable_mosaic.version = 11 : i64} {
  func.func @net1_kernel(%arg0: i32, %arg1: memref<128x128xbf16, #tpu.memory_space<vmem>>, %arg2: memref<128x256xbf16, #tpu.memory_space<vmem>>, %arg3: memref<1x256xf32, #tpu.memory_space<vmem>>, %arg4: memref<256x512xbf16, #tpu.memory_space<vmem>>, %arg5: memref<1x512xf32, #tpu.memory_space<vmem>>, %arg6: memref<512x256xbf16, #tpu.memory_space<vmem>>, %arg7: memref<1x256xf32, #tpu.memory_space<vmem>>, %arg8: memref<256x128xbf16, #tpu.memory_space<vmem>>, %arg9: memref<1x128xf32, #tpu.memory_space<vmem>>, %arg10: memref<128x128xbf16, #tpu.memory_space<vmem>>, %arg11: memref<1x128xf32, #tpu.memory_space<vmem>>, %arg12: memref<128x128xf32, #tpu.memory_space<vmem>>) attributes {dimension_semantics = [#tpu.dimension_semantics<parallel>], iteration_bounds = array<i64: 1>, scalar_prefetch = 0 : i64, scratch_operands = 0 : i64, tpu.core_type = #tpu.core_type<tc>, window_params = [{transform_indices = @transform_0, window_bounds = array<i64: 128, 128>}, {pipeline_mode = #tpu.pipeline_mode<synchronous>, transform_indices = @transform_1, window_bounds = array<i64: 128, 256>}, {pipeline_mode = #tpu.pipeline_mode<synchronous>, transform_indices = @transform_2, window_bounds = array<i64: 1, 256>}, {pipeline_mode = #tpu.pipeline_mode<synchronous>, transform_indices = @transform_3, window_bounds = array<i64: 256, 512>}, {pipeline_mode = #tpu.pipeline_mode<synchronous>, transform_indices = @transform_4, window_bounds = array<i64: 1, 512>}, {pipeline_mode = #tpu.pipeline_mode<synchronous>, transform_indices = @transform_5, window_bounds = array<i64: 512, 256>}, {pipeline_mode = #tpu.pipeline_mode<synchronous>, transform_indices = @transform_6, window_bounds = array<i64: 1, 256>}, {pipeline_mode = #tpu.pipeline_mode<synchronous>, transform_indices = @transform_7, window_bounds = array<i64: 256, 128>}, {pipeline_mode = #tpu.pipeline_mode<synchronous>, transform_indices = @transform_8, window_bounds = array<i64: 1, 128>}, {pipeline_mode = #tpu.pipeline_mode<synchronous>, transform_indices = @transform_9, window_bounds = array<i64: 128, 128>}, {pipeline_mode = #tpu.pipeline_mode<synchronous>, transform_indices = @transform_10, window_bounds = array<i64: 1, 128>}, {transform_indices = @transform_11, window_bounds = array<i64: 128, 128>}]} {
    %c0 = arith.constant 0 : index
    %c0_0 = arith.constant 0 : index
    %0 = vector.load %arg1[%c0, %c0_0] : memref<128x128xbf16, #tpu.memory_space<vmem>>, vector<128x128xbf16>
    %c0_1 = arith.constant 0 : index
    %c0_2 = arith.constant 0 : index
    %1 = vector.load %arg2[%c0_1, %c0_2] : memref<128x256xbf16, #tpu.memory_space<vmem>>, vector<128x256xbf16>
    %cst = arith.constant dense<0.000000e+00> : vector<128x256xf32>
    %2 = tpu.matmul %0, %1, %cst {dimension_numbers = #tpu.dot_dimension_numbers<[1], [0], [0], [1], [0, 0, 1, 1], [], []>} : vector<128x128xbf16>, vector<128x256xbf16>, vector<128x256xf32> -> vector<128x256xf32>
    %c0_3 = arith.constant 0 : index
    %c0_4 = arith.constant 0 : index
    %3 = vector.load %arg3[%c0_3, %c0_4] : memref<1x256xf32, #tpu.memory_space<vmem>>, vector<1x256xf32>
    %4 = vector.broadcast %3 : vector<1x256xf32> to vector<128x256xf32>
    %5 = arith.addf %2, %4 : vector<128x256xf32>
    %cst_5 = arith.constant 0.000000e+00 : f32
    %6 = vector.broadcast %cst_5 : f32 to vector<128x256xf32>
    %7 = arith.maximumf %5, %6 : vector<128x256xf32>
    %8 = arith.truncf %7 : vector<128x256xf32> to vector<128x256xbf16>
    %c0_6 = arith.constant 0 : index
    %c0_7 = arith.constant 0 : index
    %9 = vector.load %arg4[%c0_6, %c0_7] : memref<256x512xbf16, #tpu.memory_space<vmem>>, vector<256x512xbf16>
    %cst_8 = arith.constant dense<0.000000e+00> : vector<128x512xf32>
    %10 = tpu.matmul %8, %9, %cst_8 {dimension_numbers = #tpu.dot_dimension_numbers<[1], [0], [0], [1], [0, 0, 1, 1], [], []>} : vector<128x256xbf16>, vector<256x512xbf16>, vector<128x512xf32> -> vector<128x512xf32>
    %c0_9 = arith.constant 0 : index
    %c0_10 = arith.constant 0 : index
    %11 = vector.load %arg5[%c0_9, %c0_10] : memref<1x512xf32, #tpu.memory_space<vmem>>, vector<1x512xf32>
    %12 = vector.broadcast %11 : vector<1x512xf32> to vector<128x512xf32>
    %13 = arith.addf %10, %12 : vector<128x512xf32>
    %cst_11 = arith.constant 0.000000e+00 : f32
    %14 = vector.broadcast %cst_11 : f32 to vector<128x512xf32>
    %15 = arith.maximumf %13, %14 : vector<128x512xf32>
    %16 = arith.truncf %15 : vector<128x512xf32> to vector<128x512xbf16>
    %c0_12 = arith.constant 0 : index
    %c0_13 = arith.constant 0 : index
    %17 = vector.load %arg6[%c0_12, %c0_13] : memref<512x256xbf16, #tpu.memory_space<vmem>>, vector<512x256xbf16>
    %cst_14 = arith.constant dense<0.000000e+00> : vector<128x256xf32>
    %18 = tpu.matmul %16, %17, %cst_14 {dimension_numbers = #tpu.dot_dimension_numbers<[1], [0], [0], [1], [0, 0, 1, 1], [], []>} : vector<128x512xbf16>, vector<512x256xbf16>, vector<128x256xf32> -> vector<128x256xf32>
    %c0_15 = arith.constant 0 : index
    %c0_16 = arith.constant 0 : index
    %19 = vector.load %arg7[%c0_15, %c0_16] : memref<1x256xf32, #tpu.memory_space<vmem>>, vector<1x256xf32>
    %20 = vector.broadcast %19 : vector<1x256xf32> to vector<128x256xf32>
    %21 = arith.addf %18, %20 : vector<128x256xf32>
    %cst_17 = arith.constant 0.000000e+00 : f32
    %22 = vector.broadcast %cst_17 : f32 to vector<128x256xf32>
    %23 = arith.maximumf %21, %22 : vector<128x256xf32>
    %24 = arith.truncf %23 : vector<128x256xf32> to vector<128x256xbf16>
    %c0_18 = arith.constant 0 : index
    %c0_19 = arith.constant 0 : index
    %25 = vector.load %arg8[%c0_18, %c0_19] : memref<256x128xbf16, #tpu.memory_space<vmem>>, vector<256x128xbf16>
    %cst_20 = arith.constant dense<0.000000e+00> : vector<128x128xf32>
    %26 = tpu.matmul %24, %25, %cst_20 {dimension_numbers = #tpu.dot_dimension_numbers<[1], [0], [0], [1], [0, 0, 1, 1], [], []>} : vector<128x256xbf16>, vector<256x128xbf16>, vector<128x128xf32> -> vector<128x128xf32>
    %c0_21 = arith.constant 0 : index
    %c0_22 = arith.constant 0 : index
    %27 = vector.load %arg9[%c0_21, %c0_22] : memref<1x128xf32, #tpu.memory_space<vmem>>, vector<1x128xf32>
    %28 = vector.broadcast %27 : vector<1x128xf32> to vector<128x128xf32>
    %29 = arith.addf %26, %28 : vector<128x128xf32>
    %cst_23 = arith.constant 0.000000e+00 : f32
    %30 = vector.broadcast %cst_23 : f32 to vector<128x128xf32>
    %31 = arith.maximumf %29, %30 : vector<128x128xf32>
    %32 = arith.truncf %31 : vector<128x128xf32> to vector<128x128xbf16>
    %c0_24 = arith.constant 0 : index
    %c0_25 = arith.constant 0 : index
    %33 = vector.load %arg10[%c0_24, %c0_25] : memref<128x128xbf16, #tpu.memory_space<vmem>>, vector<128x128xbf16>
    %cst_26 = arith.constant dense<0.000000e+00> : vector<128x128xf32>
    %34 = tpu.matmul %32, %33, %cst_26 {dimension_numbers = #tpu.dot_dimension_numbers<[1], [0], [0], [1], [0, 0, 1, 1], [], []>} : vector<128x128xbf16>, vector<128x128xbf16>, vector<128x128xf32> -> vector<128x128xf32>
    %c0_27 = arith.constant 0 : index
    %c0_28 = arith.constant 0 : index
    %35 = vector.load %arg11[%c0_27, %c0_28] : memref<1x128xf32, #tpu.memory_space<vmem>>, vector<1x128xf32>
    %36 = vector.broadcast %35 : vector<1x128xf32> to vector<128x128xf32>
    %37 = arith.addf %34, %36 : vector<128x128xf32>
    %cst_29 = arith.constant 0.000000e+00 : f32
    %38 = vector.broadcast %cst_29 : f32 to vector<128x128xf32>
    %39 = arith.subf %38, %37 : vector<128x128xf32>
    %40 = math.exp %39 : vector<128x128xf32>
    %cst_30 = arith.constant 1.000000e+00 : f32
    %41 = vector.broadcast %cst_30 : f32 to vector<128x128xf32>
    %42 = arith.addf %41, %40 : vector<128x128xf32>
    %43 = tpu.reciprocal %42 {approx = true} : vector<128x128xf32> -> vector<128x128xf32>
    %c0_31 = arith.constant 0 : index
    %c0_32 = arith.constant 0 : index
    %44 = vector.load %arg12[%c0_31, %c0_32] : memref<128x128xf32, #tpu.memory_space<vmem>>, vector<128x128xf32>
    tpu.vector_store %arg12[%c0_31, %c0_32], %43 {strides = array<i32>} : memref<128x128xf32, #tpu.memory_space<vmem>>, vector<128x128xf32>,
    return
  }
  func.func @transform_0(%arg0: i32) -> (i32, i32) {
    %c0_i32 = arith.constant 0 : i32
    %c0_i32_0 = arith.constant 0 : i32
    return %arg0, %c0_i32 : i32, i32
  }
  func.func @transform_1(%arg0: i32) -> (i32, i32) {
    %c0_i32 = arith.constant 0 : i32
    %c0_i32_0 = arith.constant 0 : i32
    %c0_i32_1 = arith.constant 0 : i32
    return %c0_i32, %c0_i32_0 : i32, i32
  }
  func.func @transform_2(%arg0: i32) -> (i32, i32) {
    %c0_i32 = arith.constant 0 : i32
    %c0_i32_0 = arith.constant 0 : i32
    %c0_i32_1 = arith.constant 0 : i32
    return %c0_i32, %c0_i32_0 : i32, i32
  }
  func.func @transform_3(%arg0: i32) -> (i32, i32) {
    %c0_i32 = arith.constant 0 : i32
    %c0_i32_0 = arith.constant 0 : i32
    %c0_i32_1 = arith.constant 0 : i32
    return %c0_i32, %c0_i32_0 : i32, i32
  }
  func.func @transform_4(%arg0: i32) -> (i32, i32) {
    %c0_i32 = arith.constant 0 : i32
    %c0_i32_0 = arith.constant 0 : i32
    %c0_i32_1 = arith.constant 0 : i32
    return %c0_i32, %c0_i32_0 : i32, i32
  }
  func.func @transform_5(%arg0: i32) -> (i32, i32) {
    %c0_i32 = arith.constant 0 : i32
    %c0_i32_0 = arith.constant 0 : i32
    %c0_i32_1 = arith.constant 0 : i32
    return %c0_i32, %c0_i32_0 : i32, i32
  }
  func.func @transform_6(%arg0: i32) -> (i32, i32) {
    %c0_i32 = arith.constant 0 : i32
    %c0_i32_0 = arith.constant 0 : i32
    %c0_i32_1 = arith.constant 0 : i32
    return %c0_i32, %c0_i32_0 : i32, i32
  }
  func.func @transform_7(%arg0: i32) -> (i32, i32) {
    %c0_i32 = arith.constant 0 : i32
    %c0_i32_0 = arith.constant 0 : i32
    %c0_i32_1 = arith.constant 0 : i32
    return %c0_i32, %c0_i32_0 : i32, i32
  }
  func.func @transform_8(%arg0: i32) -> (i32, i32) {
    %c0_i32 = arith.constant 0 : i32
    %c0_i32_0 = arith.constant 0 : i32
    %c0_i32_1 = arith.constant 0 : i32
    return %c0_i32, %c0_i32_0 : i32, i32
  }
  func.func @transform_9(%arg0: i32) -> (i32, i32) {
    %c0_i32 = arith.constant 0 : i32
    %c0_i32_0 = arith.constant 0 : i32
    %c0_i32_1 = arith.constant 0 : i32
    return %c0_i32, %c0_i32_0 : i32, i32
  }
  func.func @transform_10(%arg0: i32) -> (i32, i32) {
    %c0_i32 = arith.constant 0 : i32
    %c0_i32_0 = arith.constant 0 : i32
    %c0_i32_1 = arith.constant 0 : i32
    return %c0_i32, %c0_i32_0 : i32, i32
  }
  func.func @transform_11(%arg0: i32) -> (i32, i32) {
    %c0_i32 = arith.constant 0 : i32
    %c0_i32_0 = arith.constant 0 : i32
    return %arg0, %c0_i32 : i32, i32
  }
}

</mosaic_0001>

<bundles_post_ra>
// kernel: tpu_custom_call.1
= control target key start
LH: loop header
LB: loop body
LE: loop exit
PB: predicated region body
PF: predicated region fallthrough
CT: control target
= control target key end

     0   :  { %16 = vsyncpa [#allocation3], 0  ;;  %s4660_s0 = inlined_call_operand.hbm [shape: bf16[128,128], index: 0, kind: input, shape index: {}]   ;;  %s4661_s1 = inlined_call_operand.hbm [shape: bf16[128,256], index: 1, kind: input, shape index: {}]   ;;  %s4662_s2 = inlined_call_operand.hbm [shape: f32[1,256], index: 2, kind: input, shape index: {}]   ;;  %s4663_s3 = inlined_call_operand.hbm [shape: bf16[256,512], index: 3, kind: input, shape index: {}]   ;;  %s4664_s4 = inlined_call_operand.hbm [shape: f32[1,512], index: 4, kind: input, shape index: {}]   ;;  %s4665_s5 = inlined_call_operand.hbm [shape: bf16[512,256], index: 5, kind: input, shape index: {}]   ;;  %s4666_s6 = inlined_call_operand.vmem [shape: f32[1,256], index: 6, kind: input, shape index: {}]   ;;  %s4667_s7 = inlined_call_operand.hbm [shape: bf16[256,128], index: 7, kind: input, shape index: {}]   ;;  %s4668_s8 = inlined_call_operand.vmem [shape: f32[1,128], index: 8, kind: input, shape index: {}]   ;;  %s4669_s9 = inlined_call_operand.hbm [shape: bf16[128,128], index: 9, kind: input, shape index: {}]   ;;  %s4670_s10 = inlined_call_operand.vmem [shape: f32[1,128], index: 10, kind: input, shape index: {}]   ;;  %s4671_s11 = inlined_call_operand.hbm [shape: f32[128,128], index: 11, kind: output, shape index: {}]  }
   0x1   :  { %17 = vsyncpa [#allocation6], 0 }
   0x2   :  { %18 = vsyncpa [#allocation9], 0 }
   0x3   :  { %19 = vsyncpa [#allocation12], 0 }
   0x4   :  { %20 = vsyncpa [#allocation15], 0  ;;  %s39_s19 = sshll.u32 %s4661_s1, 4  ;;  %s40_s19 = int_to_ptr.hbm [resolvable:$true] %s39_s19 }
   0x5   :  { %21 = vsyncpa [#allocation4], 0  ;;  %s3887_s20 = smov [#allocation5]   ;;  %s63_s24 = sshll.u32 %s4663_s3, 4  ;;  %s64_s24 = int_to_ptr.hbm [resolvable:$true] %s63_s24 }
   0x6   :  { %s41_s21 = sshll.u32 %s3887_s20, 4  ;;  %s3888_s25 = smov 128   ;;  %s42_s21 = int_to_ptr.vmem [resolvable:$true] %s41_s21 }
   0x7   :  { %s3889_s26 = smov 8   ;;  %s3890_s27 = smov [#allocation8]  }
   0x8   :  { %47 = dma.hbm_to_vmem [thread:$0]  %s40_s19, 2048, %s42_s21, [#allocation6], %s3888_s25, %s3888_s25, %s3889_s26  }
   0x9   :  { %s65_s28 = sshll.u32 %s3890_s27, 4  ;;  %s3891_s1 = smov 256   ;;  %s66_s28 = int_to_ptr.vmem [resolvable:$true] %s65_s28 }
   0xa   :  { %s3892_s29 = smov 16   ;;  %s87_s13 = sshll.u32 %s4665_s5, 4  ;;  %s88_s13 = int_to_ptr.hbm [resolvable:$true] %s87_s13 }
   0xb   :  { %71 = dma.hbm_to_vmem [thread:$0]  %s64_s24, 8192, %s66_s28, [#allocation9], %s3891_s1, %s3891_s1, %s3892_s29  }
   0xc   :  { %s3893_s14 = smov [#allocation11]   ;;  %s26_s17 = sshll.u32 %s4660_s0, 4  ;;  %s27_s17 = int_to_ptr.hbm [resolvable:$true] %s26_s17 }
   0xd   :  { %s89_s3 = sshll.u32 %s3893_s14, 4  ;;  %s3894_s18 = smov [#allocation2]   ;;  %s90_s3 = int_to_ptr.vmem [resolvable:$true] %s89_s3 }
   0xe   :  { %95 = dma.hbm_to_vmem [thread:$0]  %s88_s13, 8192, %s90_s3, [#allocation12], %s3888_s25, %s3888_s25, %s3889_s26  }
   0xf   :  { %s28_s19 = sshll.u32 %s3894_s18, 4  ;;  %s3895_s20 = smov 64   ;;  %s29_s19 = int_to_ptr.vmem [resolvable:$true] %s28_s19 }
  0x10   :  { %s3896_s21 = smov 4   ;;  %s53_s23 = sshll.u32 %s4662_s2, 4  ;;  %s54_s23 = int_to_ptr.hbm [resolvable:$true] %s53_s23 }
  0x11   :  { %34 = dma.hbm_to_vmem [thread:$0]  %s27_s17, 1024, %s29_s19, [#allocation3], %s3895_s20, %s3895_s20, %s3896_s21  }
  0x12   :  { %s3897_s24 = smov [#allocation7]   ;;  %s77_s1 = sshll.u32 %s4664_s4, 4  ;;  %s78_s1 = int_to_ptr.hbm [resolvable:$true] %s77_s1 }
  0x13   :  { %s55_s27 = sshll.u32 %s3897_s24, 4  ;;  %s3898_s29 = smov [#allocation10]   ;;  %s56_s27 = int_to_ptr.vmem [resolvable:$true] %s55_s27 }
  0x14   :  { %58 = dma.hbm_to_vmem [thread:$0]  %s54_s23, 32, %s56_s27, [#allocation6]  }
  0x15   :  { %s79_s30 = sshll.u32 %s3898_s29, 4  ;;  %s102_s14 = sshll.u32 %s4667_s7, 4  ;;  %s80_s30 = int_to_ptr.vmem [resolvable:$true] %s79_s30  ;;  %s103_s14 = int_to_ptr.hbm [resolvable:$true] %s102_s14 }
  0x16   :  { %82 = dma.hbm_to_vmem [thread:$0]  %s78_s1, 64, %s80_s30, [#allocation9]  }
  0x17   :  { %s117_s15 = sshll.u32 %s4669_s9, 4  ;;  %s3899_s16 = smov [#allocation13]   ;;  %s118_s15 = int_to_ptr.hbm [resolvable:$true] %s117_s15 }
  0x18   :  { %s104_s17 = sshll.u32 %s3899_s16, 4  ;;  %s3900_s4 = smov [#allocation14]   ;;  %s105_s17 = int_to_ptr.vmem [resolvable:$true] %s104_s17 }
  0x19   :  { %110 = dma.hbm_to_vmem [thread:$0]  %s103_s14, 2048, %s105_s17, [#allocation12], %s3895_s20, %s3895_s20, %s3896_s21  }
  0x1a   :  { %s119_s18 = sshll.u32 %s3900_s4, 4  ;;  %s120_s18 = int_to_ptr.vmem [resolvable:$true] %s119_s18 }
  0x1b   :  { %125 = dma.hbm_to_vmem [thread:$0]  %s118_s15, 1024, %s120_s18, [#allocation15], %s3895_s20, %s3895_s20, %s3896_s21  }
  0x1c   :  { %3875 = dma.done.wait [#allocation3], 1024  }
  0x1d   :  { %3876 = vsyncadd [#allocation3], 4294966272 }
  0x1e   :  { %3877 = dma.done.wait [#allocation6], 2080  }
  0x1f   :  { %3878 = vsyncadd [#allocation6], 4294965216 }
  0x20   :  { %3879 = dma.done.wait [#allocation9], 8256  }
  0x21   :  { %3880 = vsyncadd [#allocation9], 4294959040 }
  0x22   :  { %3881 = dma.done.wait [#allocation12], 10240  }
  0x23   :  { %3882 = vsyncadd [#allocation12], 4294957056 }
  0x24   :  { %3883 = dma.done.wait [#allocation15], 1024  }
  0x25   :  { %3884 = vsyncadd [#allocation15], 4294966272  ;;  %v2764_v0 = vld [vmem:[#allocation5 + $0x70] sm:$0xf]  ;;  %v3401_v1 = vld [vmem:[#allocation5 + $0x74] sm:$0xf0] }
  0x26   :  { %v2756_v2 = vld [vmem:[#allocation5 + $0x60] sm:$0xf]  ;;  %v2765_v3 = vor.u32 %v3401_v1, %v2764_v0  ;;  %v3399_v4 = vld [vmem:[#allocation5 + $0x64] sm:$0xf0]  ;;  %v2748_v6 = vld [vmem:[#allocation5 + $0x50] sm:$0xf] }
  0x27   :  { %v2757_v5 = vor.u32 %v3399_v4, %v2756_v2  ;;  %v3397_v7 = vld [vmem:[#allocation5 + $0x54] sm:$0xf0]  ;;  %v2740_v9 = vld [vmem:[#allocation5 + $0x40] sm:$0xf]  ;;  %v3395_v10 = vld [vmem:[#allocation5 + $0x44] sm:$0xf0] }
  0x28   :  { %326 = vmatpush.bf16.msra.mxu0 %v2765_v3  ;;  %3554 = vmatpush.bf16.msra.mxu1 %v2765_v3  ;;  %v2749_v8 = vor.u32 %v3397_v7, %v2748_v6  ;;  %v2741_v11 = vor.u32 %v3395_v10, %v2740_v9  ;;  %v2732_v12 = vld [vmem:[#allocation5 + $0x30] sm:$0xf]  ;;  %v3393_v13 = vld [vmem:[#allocation5 + $0x34] sm:$0xf0]  ;;  %v2724_v15 = vld [vmem:[#allocation5 + $0x20] sm:$0xf] }
  0x29   :  { %3555 = vmatpush.bf16.msra.mxu2 %v2765_v3  ;;  %3556 = vmatpush.bf16.msra.mxu3 %v2765_v3  ;;  %v2733_v14 = vor.u32 %v3393_v13, %v2732_v12  ;;  %v3391_v16 = vld [vmem:[#allocation5 + $0x24] sm:$0xf0]  ;;  %v2716_v18 = vld [vmem:[#allocation5 + $0x10] sm:$0xf]  ;;  %v3389_v19 = vld [vmem:[#allocation5 + $0x14] sm:$0xf0] }
  0x2a   :  { %v2725_v17 = vor.u32 %v3391_v16, %v2724_v15  ;;  %v2717_v20 = vor.u32 %v3389_v19, %v2716_v18  ;;  %v2708_v21 = vld [vmem:[#allocation5] sm:$0xf]  ;;  %v3387_v22 = vld [vmem:[#allocation5 + $0x4] sm:$0xf0]  ;;  %v3400_v23 = vld [vmem:[#allocation5 + $0x74] sm:$0xf] }
  0x2b   :  { %v2766_v24 = vld [vmem:[#allocation5 + $0x78] sm:$0xf0]  ;;  %v2709_v25 = vor.u32 %v3387_v22, %v2708_v21  ;;  %v3398_v27 = vld [vmem:[#allocation5 + $0x64] sm:$0xf]  ;;  %v2758_v28 = vld [vmem:[#allocation5 + $0x68] sm:$0xf0] }
  0x2c   :  { %327 = vmatpush.bf16.msra.mxu0 %v2757_v5  ;;  %3557 = vmatpush.bf16.msra.mxu1 %v2757_v5  ;;  %v2769_v26 = vor.u32 %v3400_v23, %v2766_v24  ;;  %v3378_v29 = vld [vmem:[#allocation2] sm:$0xff]  ;;  %v3380_v30 = vld [vmem:[#allocation2 + $0x10] sm:$0xff]  ;;  %v2761_v31 = vor.u32 %v3398_v27, %v2758_v28  ;;  %v2750_v33 = vld [vmem:[#allocation5 + $0x58] sm:$0xf0]  ;;  %s2657_s23 = sshll.u32 %s4671_s11, 4  ;;  %s2658_s23 = int_to_ptr.hbm [resolvable:$true] %s2657_s23 }
  0x2d   :  { %3558 = vmatpush.bf16.msra.mxu2 %v2757_v5  ;;  %3559 = vmatpush.bf16.msra.mxu3 %v2757_v5  ;;  %v3396_v32 = vld [vmem:[#allocation5 + $0x54] sm:$0xf]  ;;  %v3394_v35 = vld [vmem:[#allocation5 + $0x44] sm:$0xf]  ;;  %v2742_v36 = vld [vmem:[#allocation5 + $0x48] sm:$0xf0] }
  0x2e   :  { %v2753_v34 = vor.u32 %v3396_v32, %v2750_v33  ;;  %v2745_v37 = vor.u32 %v3394_v35, %v2742_v36  ;;  %v3392_v38 = vld [vmem:[#allocation5 + $0x34] sm:$0xf]  ;;  %v2734_v39 = vld [vmem:[#allocation5 + $0x38] sm:$0xf0]  ;;  %v3390_v41 = vld [vmem:[#allocation5 + $0x24] sm:$0xf] }
  0x2f   :  { %v2737_v40 = vor.u32 %v3392_v38, %v2734_v39  ;;  %v2726_v42 = vld [vmem:[#allocation5 + $0x28] sm:$0xf0]  ;;  %v3381_v44 = vld [vmem:[#allocation2 + $0x18] sm:$0xff]  ;;  %v3388_v46 = vld [vmem:[#allocation5 + $0x14] sm:$0xf] }
  0x30   :  { %328 = vmatpush.bf16.msra.mxu0 %v2749_v8  ;;  %3560 = vmatpush.bf16.msra.mxu1 %v2749_v8  ;;  %v3379_v43 = vld [vmem:[#allocation2 + $0x8] sm:$0xff]  ;;  %v2729_v45 = vor.u32 %v3390_v41, %v2726_v42  ;;  %v2718_v47 = vld [vmem:[#allocation5 + $0x18] sm:$0xf0]  ;;  %v3992_v48 = vld [vmem:[#allocation2 + $0x20] sm:$0xff] }
  0x31   :  { %3561 = vmatpush.bf16.msra.mxu2 %v2749_v8  ;;  %3562 = vmatpush.bf16.msra.mxu3 %v2749_v8  ;;  %v2721_v49 = vor.u32 %v3388_v46, %v2718_v47  ;;  %v3386_v50 = vld [vmem:[#allocation5 + $0x4] sm:$0xf]  ;;  %v2710_v51 = vld [vmem:[#allocation5 + $0x8] sm:$0xf0]  ;;  %v3014_v53 = vld [vmem:[#allocation8 + $0x1f0] sm:$0xf0] }
  0x32   :  { %v3462_v52 = vld [vmem:[#allocation8 + $0x1e4] sm:$0xf]  ;;  %v2713_v54 = vor.u32 %v3386_v50, %v2710_v51  ;;  %v2998_v57 = vld [vmem:[#allocation8 + $0x1d0] sm:$0xf0]  ;;  %v2884_v4 = vld [vmem:[#allocation8 + $0xe0] sm:$0xf] }
  0x33   :  { %v3017_v55 = vor.u32 %v3462_v52, %v3014_v53  ;;  %v3458_v56 = vld [vmem:[#allocation8 + $0x1c4] sm:$0xf]  ;;  %v2982_v61 = vld [vmem:[#allocation8 + $0x1b0] sm:$0xf0]  ;;  %v3432_v5 = vld [vmem:[#allocation8 + $0xec] sm:$0xf0] }
  0x34   :  { %329 = vmatpush.bf16.msra.mxu0 %v2741_v11  ;;  %3563 = vmatpush.bf16.msra.mxu1 %v2741_v11  ;;  %v3995_v58 = vld [vmem:[#allocation2 + $0x28] sm:$0xff]  ;;  %v3001_v59 = vor.u32 %v3458_v56, %v2998_v57  ;;  %v3998_v62 = vld [vmem:[#allocation2 + $0x30] sm:$0xff]  ;;  %v4001_v2 = vld [vmem:[#allocation2 + $0x38] sm:$0xff]  ;;  %v2885_v7 = vor.u32 %v3432_v5, %v2884_v4 }
  0x35   :  { %3564 = vmatpush.bf16.msra.mxu2 %v2741_v11  ;;  %3565 = vmatpush.bf16.msra.mxu3 %v2741_v11  ;;  %v3454_v60 = vld [vmem:[#allocation8 + $0x1a4] sm:$0xf]  ;;  %v2966_v1 = vld [vmem:[#allocation8 + $0x190] sm:$0xf0]  ;;  %v2868_v10 = vld [vmem:[#allocation8 + $0xc0] sm:$0xf] }
  0x36   :  { %v2985_v63 = vor.u32 %v3454_v60, %v2982_v61  ;;  %v3450_v0 = vld [vmem:[#allocation8 + $0x184] sm:$0xf]  ;;  %v2886_v8 = vld [vmem:[#allocation8 + $0xf0] sm:$0xf0]  ;;  %v3428_v11 = vld [vmem:[#allocation8 + $0xcc] sm:$0xf0] }
  0x37   :  { %v2969_v3 = vor.u32 %v3450_v0, %v2966_v1  ;;  %v3430_v6 = vld [vmem:[#allocation8 + $0xe4] sm:$0xf]  ;;  %v2869_v13 = vor.u32 %v3428_v11, %v2868_v10  ;;  %v2852_v18 = vld [vmem:[#allocation8 + $0xa0] sm:$0xf]  ;;  %v2854_v22 = vld [vmem:[#allocation8 + $0xb0] sm:$0xf0] }
  0x38   :  { %330 = vmatpush.bf16.msra.mxu0 %v2733_v14  ;;  %3566 = vmatpush.bf16.msra.mxu1 %v2733_v14  ;;  %v2889_v9 = vor.u32 %v3430_v6, %v2886_v8  ;;  %v3426_v12 = vld [vmem:[#allocation8 + $0xc4] sm:$0xf]  ;;  %v2838_v28 = vld [vmem:[#allocation8 + $0x90] sm:$0xf0]  ;;  %v3416_v32 = vld [vmem:[#allocation8 + $0x6c] sm:$0xf0] }
  0x39   :  { %3567 = vmatpush.bf16.msra.mxu2 %v2733_v14  ;;  %3568 = vmatpush.bf16.msra.mxu3 %v2733_v14  ;;  %v2870_v14 = vld [vmem:[#allocation8 + $0xd0] sm:$0xf0]  ;;  %v3446_v16 = vld [vmem:[#allocation8 + $0x164] sm:$0xf]  ;;  %v3412_v38 = vld [vmem:[#allocation8 + $0x4c] sm:$0xf0] }
  0x3a   :  { %v2873_v15 = vor.u32 %v3426_v12, %v2870_v14  ;;  %v3422_v21 = vld [vmem:[#allocation8 + $0xa4] sm:$0xf]  ;;  %v2822_v35 = vld [vmem:[#allocation8 + $0x70] sm:$0xf0]  ;;  %v2788_v46 = vld [vmem:[#allocation8 + $0x20] sm:$0xf] }
  0x3b   :  { %v2857_v24 = vor.u32 %v3422_v21, %v2854_v22  ;;  %v3418_v27 = vld [vmem:[#allocation8 + $0x84] sm:$0xf]  ;;  %v2806_v41 = vld [vmem:[#allocation8 + $0x50] sm:$0xf0]  ;;  %v3408_v47 = vld [vmem:[#allocation8 + $0x2c] sm:$0xf0] }
  0x3c   :  { %331 = vmatpush.bf16.msra.mxu0 %v2725_v17  ;;  %3569 = vmatpush.bf16.msra.mxu1 %v2725_v17  ;;  %v3414_v33 = vld [vmem:[#allocation8 + $0x64] sm:$0xf]  ;;  %v2789_v50 = vor.u32 %v3408_v47, %v2788_v46  ;;  %v2790_v51 = vld [vmem:[#allocation8 + $0x30] sm:$0xf0]  ;;  %v2772_v53 = vld [vmem:[#allocation8] sm:$0xf] }
  0x3d   :  { %3570 = vmatpush.bf16.msra.mxu2 %v2725_v17  ;;  %3571 = vmatpush.bf16.msra.mxu3 %v2725_v17  ;;  %v2950_v17 = vld [vmem:[#allocation8 + $0x170] sm:$0xf0]  ;;  %v2825_v36 = vor.u32 %v3414_v33, %v2822_v35  ;;  %v3410_v39 = vld [vmem:[#allocation8 + $0x44] sm:$0xf]  ;;  %v3464_v60 = vld [vmem:[#allocation8 + $0x1ec] sm:$0xf0] }
  0x3e   :  { %v2953_v19 = vor.u32 %v3446_v16, %v2950_v17  ;;  %v2809_v42 = vor.u32 %v3410_v39, %v2806_v41  ;;  %v3460_v0 = vld [vmem:[#allocation8 + $0x1cc] sm:$0xf0]  ;;  %v3438_v5 = vld [vmem:[#allocation8 + $0x124] sm:$0xf]  ;;  %v2948_v12 = vld [vmem:[#allocation8 + $0x160] sm:$0xf] }
  0x3f   :  { %v3456_v4 = vld [vmem:[#allocation8 + $0x1ac] sm:$0xf0]  ;;  %v2932_v17 = vld [vmem:[#allocation8 + $0x140] sm:$0xf]  ;;  %v3020_v41 = vld [vmem:[#allocation8 + $0x1e8] sm:$0xf] }
  0x40   :  { %332 = vmatpush.bf16.msra.mxu0 %v2717_v20  ;;  %3572 = vmatpush.bf16.msra.mxu1 %v2717_v20  ;;  %v3452_v10 = vld [vmem:[#allocation8 + $0x18c] sm:$0xf0]  ;;  %v2916_v21 = vld [vmem:[#allocation8 + $0x120] sm:$0xf]  ;;  %v3463_v47 = vld [vmem:[#allocation8 + $0x1ec] sm:$0xf] }
  0x41   :  { %3573 = vmatpush.bf16.msra.mxu2 %v2717_v20  ;;  %3574 = vmatpush.bf16.msra.mxu3 %v2717_v20  ;;  %v3424_v20 = vld [vmem:[#allocation8 + $0xac] sm:$0xf0] }
  0x42   :  { %v2853_v23 = vor.u32 %v3424_v20, %v2852_v18  ;;  %v3444_v18 = vld [vmem:[#allocation8 + $0x14c] sm:$0xf0] }
  0x43   :  { %v3440_v22 = vld [vmem:[#allocation8 + $0x12c] sm:$0xf0] }
  0x44   :  { %333 = vmatpush.bf16.msra.mxu0 %v2709_v25  ;;  %3575 = vmatpush.bf16.msra.mxu1 %v2709_v25  ;;  %v3436_v33 = vld [vmem:[#allocation8 + $0x10c] sm:$0xf0] }
  0x45   :  { %3576 = vmatpush.bf16.msra.mxu2 %v2709_v25  ;;  %3577 = vmatpush.bf16.msra.mxu3 %v2709_v25  ;;  %v2836_v25 = vld [vmem:[#allocation8 + $0x80] sm:$0xf] }
  0x47   :  { %334 = vmatmul.bf16.vlgmr.msra.gmra.mxu0 %v3378_v29  ;;  %344 = vmatmul.bf16.vlgmr.msra.gmra.mxu1 %v3380_v30 }
  0x48   :  { %375 = vmatpush.bf16.msrb.mxu1 %v2769_v26  ;;  %354 = vmatmul.bf16.vlgmr.msra.gmra.mxu2 %v3992_v48  ;;  %v3420_v26 = vld [vmem:[#allocation8 + $0x8c] sm:$0xf0] }
  0x49   :  { %364 = vmatmul.bf16.vlgmr.msra.gmra.mxu3 %v3998_v62  ;;  %866 = vmatpush.bf16.msrb.mxu2 %v2885_v7  ;;  %v2918_v7 = vld [vmem:[#allocation8 + $0x130] sm:$0xf0] }
  0x4a   :  { %964 = vmatpush.bf16.msrb.mxu0 %v2889_v9  ;;  %v2921_v8 = vor.u32 %v3438_v5, %v2918_v7  ;;  %v2964_v9 = vld [vmem:[#allocation8 + $0x180] sm:$0xf]  ;;  %v3006_v7 = vld [vmem:[#allocation8 + $0x1d8] sm:$0xf0] }
  0x4b   :  { %v2965_v11 = vor.u32 %v3452_v10, %v2964_v9 }
  0x4c   :  { %376 = vmatpush.bf16.msrb.mxu1 %v2761_v31  ;;  %v2820_v31 = vld [vmem:[#allocation8 + $0x60] sm:$0xf] }
  0x4d   :  { %867 = vmatpush.bf16.msrb.mxu2 %v2869_v13  ;;  %v3448_v13 = vld [vmem:[#allocation8 + $0x16c] sm:$0xf0] }
  0x4e   :  { %965 = vmatpush.bf16.msrb.mxu0 %v2873_v15  ;;  %v2949_v14 = vor.u32 %v3448_v13, %v2948_v12  ;;  %v4006_v15 = vld [vmem:[#allocation7] sm:$0x3] }
  0x4f   :  { %v4011_v20 = vperm.slane %v4006_v15, 0 }
  0x50   :  { %377 = vmatpush.bf16.msrb.mxu1 %v2753_v34  ;;  %v2821_v34 = vor.u32 %v3416_v32, %v2820_v31  ;;  %v2900_v32 = vld [vmem:[#allocation8 + $0x100] sm:$0xf] }
  0x51   :  { %868 = vmatpush.bf16.msrb.mxu2 %v2853_v23  ;;  %v2917_v23 = vor.u32 %v3440_v22, %v2916_v21  ;;  %v2860_v21 = vld [vmem:[#allocation8 + $0xa8] sm:$0xf]  ;;  %v3425_v22 = vld [vmem:[#allocation8 + $0xb4] sm:$0xf0] }
  0x52   :  { %966 = vmatpush.bf16.msrb.mxu0 %v2857_v24  ;;  %v3434_v24 = vld [vmem:[#allocation8 + $0x104] sm:$0xf] }
  0x54   :  { %378 = vmatpush.bf16.msrb.mxu1 %v2745_v37  ;;  %v2804_v37 = vld [vmem:[#allocation8 + $0x40] sm:$0xf] }
  0x57   :  { %339 = vmatmul.bf16.gmra.mxu0 %v3379_v43  ;;  %349 = vmatmul.bf16.gmra.mxu1 %v3381_v44 }
  0x58   :  { %379 = vmatpush.bf16.msrb.mxu1 %v2737_v40  ;;  %359 = vmatmul.bf16.gmra.mxu2 %v3995_v58  ;;  %v2805_v40 = vor.u32 %v3412_v38, %v2804_v37  ;;  %v3433_v37 = vld [vmem:[#allocation8 + $0xf4] sm:$0xf0] }
  0x59   :  { %369 = vmatmul.bf16.gmra.mxu3 %v4001_v2 }
  0x5c   :  { %380 = vmatpush.bf16.msrb.mxu1 %v2729_v45 }
  0x60   :  { %381 = vmatpush.bf16.msrb.mxu1 %v2721_v49  ;;  %v3406_v49 = vld [vmem:[#allocation8 + $0x24] sm:$0xf] }
  0x61   :  { %v2793_v52 = vor.u32 %v3406_v49, %v2790_v51  ;;  %v3022_v49 = vld [vmem:[#allocation8 + $0x1f8] sm:$0xf0] }
  0x62   :  { %v3025_v51 = vor.u32 %v3463_v47, %v3022_v49  ;;  %v2844_v47 = vld [vmem:[#allocation8 + $0x88] sm:$0xf]  ;;  %v3421_v49 = vld [vmem:[#allocation8 + $0x94] sm:$0xf0] }
  0x64   :  { %382 = vmatpush.bf16.msrb.mxu1 %v2713_v54  ;;  %v3404_v54 = vld [vmem:[#allocation8 + $0xc] sm:$0xf0] }
  0x65   :  { %v2773_v56 = vor.u32 %v3404_v54, %v2772_v53 }
  0x67   :  { %383 = vmatmul.bf16.vlgmr.msrb.gmra.mxu1 %v3378_v29  ;;  %v2837_v29 = vor.u32 %v3420_v26, %v2836_v25  ;;  %v2902_v25 = vld [vmem:[#allocation8 + $0x110] sm:$0xf0] }
  0x68   :  { %1013 = vmatpush.bf16.msra.mxu1 %v3017_v55  ;;  %v3402_v55 = vld [vmem:[#allocation8 + $0x4] sm:$0xf] }
  0x69   :  { %869 = vmatpush.bf16.msrb.mxu2 %v2837_v29 }
  0x6c   :  { %1014 = vmatpush.bf16.msra.mxu1 %v3001_v59  ;;  %v3012_v59 = vld [vmem:[#allocation8 + $0x1e0] sm:$0xf] }
  0x6d   :  { %870 = vmatpush.bf16.msrb.mxu2 %v2821_v34  ;;  %v3013_v61 = vor.u32 %v3464_v60, %v3012_v59  ;;  %v2901_v34 = vor.u32 %v3436_v33, %v2900_v32  ;;  %v2990_v32 = vld [vmem:[#allocation8 + $0x1b8] sm:$0xf0] }
  0x6f   :  { %915 = vmatpush.bf16.msrb.mxu3 %v3013_v61  ;;  %v3004_v61 = vld [vmem:[#allocation8 + $0x1c8] sm:$0xf] }
  0x70   :  { %1015 = vmatpush.bf16.msra.mxu1 %v2985_v63  ;;  %v2996_v63 = vld [vmem:[#allocation8 + $0x1c0] sm:$0xf] }
  0x71   :  { %871 = vmatpush.bf16.msrb.mxu2 %v2805_v40  ;;  %v2997_v1 = vor.u32 %v3460_v0, %v2996_v63  ;;  %v3461_v63 = vld [vmem:[#allocation8 + $0x1d4] sm:$0xf0] }
  0x72   :  { %v3005_v0 = vor.u32 %v3461_v63, %v3004_v61 }
  0x73   :  { %916 = vmatpush.bf16.msrb.mxu3 %v2997_v1  ;;  %v4030_v1 = vperm.slane %v4006_v15, 1 }
  0x74   :  { %1016 = vmatpush.bf16.msra.mxu1 %v2969_v3  ;;  %v2980_v3 = vld [vmem:[#allocation8 + $0x1a0] sm:$0xf] }
  0x75   :  { %872 = vmatpush.bf16.msrb.mxu2 %v2789_v50  ;;  %v2981_v6 = vor.u32 %v3456_v4, %v2980_v3  ;;  %v3427_v3 = vld [vmem:[#allocation8 + $0xcc] sm:$0xf]  ;;  %v2878_v4 = vld [vmem:[#allocation8 + $0xd8] sm:$0xf0] }
  0x76   :  { %v2881_v5 = vor.u32 %v3427_v3, %v2878_v4 }
  0x77   :  { %388 = vmatmul.bf16.gmra.mxu1 %v3379_v43  ;;  %v3442_v43 = vld [vmem:[#allocation8 + $0x144] sm:$0xf]  ;;  %917 = vmatpush.bf16.msrb.mxu3 %v2981_v6  ;;  %v3459_v6 = vld [vmem:[#allocation8 + $0x1cc] sm:$0xf] }
  0x78   :  { %1017 = vmatpush.bf16.msra.mxu1 %v2953_v19  ;;  %v2933_v19 = vor.u32 %v3444_v18, %v2932_v17  ;;  %v3009_v9 = vor.u32 %v3459_v6, %v3006_v7 }
  0x79   :  { %873 = vmatpush.bf16.msrb.mxu2 %v2773_v56 }
  0x7b   :  { %918 = vmatpush.bf16.msrb.mxu3 %v2965_v11 }
  0x7f   :  { %919 = vmatpush.bf16.msrb.mxu3 %v2949_v14 }
  0x83   :  { %920 = vmatpush.bf16.msrb.mxu3 %v2933_v19 }
  0x87   :  { %393 = vmatmul.bf16.gmra.mxu1 %v3380_v30  ;;  %v2841_v30 = vor.u32 %v3418_v27, %v2838_v28  ;;  %v2905_v27 = vor.u32 %v3434_v24, %v2902_v25  ;;  %921 = vmatpush.bf16.msrb.mxu3 %v2917_v23  ;;  %v2861_v23 = vor.u32 %v3425_v22, %v2860_v21  ;;  %v2988_v24 = vld [vmem:[#allocation8 + $0x1a8] sm:$0xf]  ;;  %v3457_v25 = vld [vmem:[#allocation8 + $0x1b4] sm:$0xf0] }
  0x89   :  { %967 = vmatpush.bf16.msrb.mxu0 %v2841_v30 }
  0x8b   :  { %922 = vmatpush.bf16.msrb.mxu3 %v2901_v34 }
  0x8d   :  { %968 = vmatpush.bf16.msrb.mxu0 %v2825_v36  ;;  %v2892_v36 = vld [vmem:[#allocation8 + $0xe8] sm:$0xf] }
  0x8e   :  { %v2893_v38 = vor.u32 %v3433_v37, %v2892_v36 }
  0x90   :  { %1062 = vmatpush.bf16.msra.mxu2 %v2893_v38 }
  0x91   :  { %969 = vmatpush.bf16.msrb.mxu0 %v2809_v42  ;;  %v3465_v42 = vld [vmem:[#allocation8 + $0x1f4] sm:$0xf0] }
  0x95   :  { %970 = vmatpush.bf16.msrb.mxu0 %v2793_v52 }
  0x97   :  { %398 = vmatmul.bf16.gmra.mxu1 %v3381_v44  ;;  %v2934_v44 = vld [vmem:[#allocation8 + $0x150] sm:$0xf0] }
  0x98   :  { %v2937_v45 = vor.u32 %v3442_v43, %v2934_v44  ;;  %v3021_v43 = vor.u32 %v3465_v42, %v3020_v41  ;;  %v3431_v44 = vld [vmem:[#allocation8 + $0xec] sm:$0xf] }
  0x9a   :  { %1018 = vmatpush.bf16.msra.mxu1 %v2937_v45  ;;  %1111 = vmatpush.bf16.msra.mxu3 %v3021_v43  ;;  %v2894_v45 = vld [vmem:[#allocation8 + $0xf8] sm:$0xf0] }
  0x9b   :  { %v2897_v46 = vor.u32 %v3431_v44, %v2894_v45 }
  0x9e   :  { %1019 = vmatpush.bf16.msra.mxu1 %v2921_v8  ;;  %1112 = vmatpush.bf16.msra.mxu3 %v3005_v0 }
  0xa2   :  { %1020 = vmatpush.bf16.msra.mxu1 %v2905_v27 }
  0xa6   :  { %1209 = vmatpush.bf16.msrb.mxu1 %v3025_v51  ;;  %v2972_v51 = vld [vmem:[#allocation8 + $0x188] sm:$0xf] }
  0xa7   :  { %403 = vmatmul.bf16.gmra.mxu1 %v3992_v48  ;;  %v2774_v48 = vld [vmem:[#allocation8 + $0x10] sm:$0xf0] }
  0xa8   :  { %v2777_v57 = vor.u32 %v3402_v55, %v2774_v48 }
  0xaa   :  { %971 = vmatpush.bf16.msrb.mxu0 %v2777_v57  ;;  %v3429_v57 = vld [vmem:[#allocation8 + $0xd4] sm:$0xf0]  ;;  %1210 = vmatpush.bf16.msrb.mxu1 %v3009_v9 }
  0xae   :  { %1160 = vmatpush.bf16.msra.mxu0 %v2897_v46 }
  0xb2   :  { %1161 = vmatpush.bf16.msra.mxu0 %v2881_v5 }
  0xb7   :  { %408 = vmatmul.bf16.gmra.mxu1 %v3995_v58 }
  0xc4   :  { %v335_v16 = vpop.f32.mrf.mxu0  ;;  %v4008_v58 = vpop.f32.mrf.mxu1 }
  0xc5   :  { %v336_v26 = vadd.f32 %v335_v16, %v4011_v20  ;;  %v346_v10 = vadd.f32 %v4008_v58, %v4011_v20 }
  0xc7   :  { %413 = vmatmul.bf16.gmra.mxu1 %v3998_v62  ;;  %v424_v30 = vmax.f32 %v336_v26, 0.0  ;;  %v432_v15 = vmax.f32 %v346_v10, 0.0  ;;  %v2989_v26 = vor.u32 %v3457_v25, %v2988_v24  ;;  %v3415_v24 = vld [vmem:[#allocation8 + $0x6c] sm:$0xf]  ;;  %v2830_v25 = vld [vmem:[#allocation8 + $0x78] sm:$0xf0] }
  0xc9   :  { %1113 = vmatpush.bf16.msra.mxu3 %v2989_v26  ;;  %v2833_v26 = vor.u32 %v3415_v24, %v2830_v25  ;;  %v2924_v25 = vld [vmem:[#allocation8 + $0x128] sm:$0xf] }
  0xcb   :  { %v355_v27 = vpop.f32.mrf.mxu2 }
  0xcc   :  { %v337_v28 = vpop.f32.mrf.mxu0  ;;  %v347_v29 = vpop.f32.mrf.mxu1 }
  0xcd   :  { %v338_v31 = vadd.f32 %v337_v28, %v4011_v20  ;;  %v348_v8 = vadd.f32 %v347_v29, %v4011_v20  ;;  %v3423_v28 = vld [vmem:[#allocation8 + $0xac] sm:$0xf]  ;;  %v2862_v29 = vld [vmem:[#allocation8 + $0xb8] sm:$0xf0]  ;;  %v365_v22 = vpop.f32.mrf.mxu3 }
  0xcf   :  { %v426_v62 = vmax.f32 %v338_v31, 0.0  ;;  %v434_v13 = vmax.f32 %v348_v8, 0.0  ;;  %v3455_v31 = vld [vmem:[#allocation8 + $0x1ac] sm:$0xf] }
  0xd0   :  { %v2993_v34 = vor.u32 %v3455_v31, %v2990_v32 }
  0xd1   :  { %v4016_v35 = vpack.c.bf16 %v426_v62, %v424_v30  ;;  %v4037_v18 = vpack.c.bf16 %v434_v13, %v432_v15  ;;  %v2865_v30 = vor.u32 %v3423_v28, %v2862_v29  ;;  %v2958_v28 = vld [vmem:[#allocation8 + $0x178] sm:$0xf0] }
  0xd2   :  { %1211 = vmatpush.bf16.msrb.mxu1 %v2993_v34 }
  0xd3   :  { %874 = vmatmul.bf16.vlgmr.msrb.gmra.mxu2 %v4016_v35  ;;  %972 = vmatmul.bf16.vlgmr.msrb.gmra.mxu0 %v4016_v35  ;;  %v357_v44 = vpop.f32.mrf.mxu2 }
  0xd4   :  { %v340_v39 = vpop.f32.mrf.mxu0  ;;  %v4020_v40 = vpop.f32.mrf.mxu1  ;;  %1162 = vmatpush.bf16.msra.mxu0 %v2865_v30 }
  0xd5   :  { %v341_v50 = vadd.f32 %v340_v39, %v4011_v20  ;;  %v351_v62 = vadd.f32 %v4020_v40, %v4011_v20 }
  0xd7   :  { %418 = vmatmul.bf16.gmra.mxu1 %v4001_v2  ;;  %v428_v54 = vmax.f32 %v341_v50, 0.0  ;;  %v2876_v2 = vld [vmem:[#allocation8 + $0xc8] sm:$0xf]  ;;  %v436_v41 = vmax.f32 %v351_v62, 0.0  ;;  %v2845_v50 = vor.u32 %v3421_v49, %v2844_v47  ;;  %v3445_v49 = vld [vmem:[#allocation8 + $0x154] sm:$0xf0] }
  0xd8   :  { %v2877_v59 = vor.u32 %v3429_v57, %v2876_v2  ;;  %v2846_v2 = vld [vmem:[#allocation8 + $0x98] sm:$0xf0]  ;;  %v2940_v47 = vld [vmem:[#allocation8 + $0x148] sm:$0xf] }
  0xda   :  { %1063 = vmatpush.bf16.msra.mxu2 %v2877_v59  ;;  %v3451_v59 = vld [vmem:[#allocation8 + $0x18c] sm:$0xf] }
  0xdb   :  { %v360_v63 = vpop.f32.mrf.mxu2 }
  0xdc   :  { %v342_v52 = vpop.f32.mrf.mxu0  ;;  %v352_v53 = vpop.f32.mrf.mxu1 }
  0xdd   :  { %v343_v55 = vadd.f32 %v342_v52, %v4011_v20  ;;  %v353_v33 = vadd.f32 %v352_v53, %v4011_v20  ;;  %v3453_v52 = vld [vmem:[#allocation8 + $0x194] sm:$0xf0] }
  0xde   :  { %1064 = vmatpush.bf16.msra.mxu2 %v2861_v23  ;;  %v2973_v53 = vor.u32 %v3453_v52, %v2972_v51  ;;  %v361_v23 = vadd.f32 %v360_v63, %v4011_v20  ;;  %v2814_v51 = vld [vmem:[#allocation8 + $0x58] sm:$0xf0]  ;;  %v366_v52 = vadd.f32 %v365_v22, %v4011_v20 }
  0xdf   :  { %v430_v56 = vmax.f32 %v343_v55, 0.0  ;;  %v438_v38 = vmax.f32 %v353_v33, 0.0  ;;  %v358_v55 = vadd.f32 %v357_v44, %v4011_v20 }
  0xe0   :  { %1114 = vmatpush.bf16.msra.mxu3 %v2973_v53  ;;  %v444_v30 = vmax.f32 %v361_v23, 0.0  ;;  %v448_v63 = vmax.f32 %v366_v52, 0.0 }
  0xe1   :  { %v4025_v48 = vpack.c.bf16 %v430_v56, %v428_v54  ;;  %v4050_v45 = vpack.c.bf16 %v438_v38, %v436_v41  ;;  %v356_v54 = vadd.f32 %v355_v27, %v4011_v20  ;;  %v3419_v56 = vld [vmem:[#allocation8 + $0x8c] sm:$0xf]  ;;  %v442_v4 = vmax.f32 %v358_v55, 0.0  ;;  %v367_v38 = vpop.f32.mrf.mxu3  ;;  %v2812_v41 = vld [vmem:[#allocation8 + $0x48] sm:$0xf] }
  0xe2   :  { %1065 = vmatpush.bf16.msra.mxu2 %v2845_v50  ;;  %v2849_v57 = vor.u32 %v3419_v56, %v2846_v2  ;;  %v3447_v27 = vld [vmem:[#allocation8 + $0x16c] sm:$0xf]  ;;  %v2941_v50 = vor.u32 %v3445_v49, %v2940_v47  ;;  %v368_v53 = vadd.f32 %v367_v38, %v4011_v20  ;;  %v2942_v56 = vld [vmem:[#allocation8 + $0x158] sm:$0xf0]  ;;  %v2908_v47 = vld [vmem:[#allocation8 + $0x108] sm:$0xf] }
  0xe3   :  { %879 = vmatmul.bf16.gmra.mxu2 %v4025_v48  ;;  %977 = vmatmul.bf16.gmra.mxu0 %v4025_v48  ;;  %v440_v0 = vmax.f32 %v356_v54, 0.0  ;;  %v362_v15 = vpop.f32.mrf.mxu2  ;;  %v2961_v29 = vor.u32 %v3447_v27, %v2958_v28  ;;  %v3443_v55 = vld [vmem:[#allocation8 + $0x14c] sm:$0xf]  ;;  %v3437_v49 = vld [vmem:[#allocation8 + $0x114] sm:$0xf0] }
  0xe4   :  { %v384_v60 = vpop.f32.mrf.mxu1  ;;  %1163 = vmatpush.bf16.msra.mxu0 %v2849_v57  ;;  %v2945_v2 = vor.u32 %v3443_v55, %v2942_v56 }
  0xe5   :  { %v385_v11 = vadd.f32 %v384_v60, %v4030_v1  ;;  %v2974_v60 = vld [vmem:[#allocation8 + $0x198] sm:$0xf0]  ;;  %v4062_v8 = vpack.c.bf16 %v442_v4, %v440_v0 }
  0xe6   :  { %v2977_v61 = vor.u32 %v3451_v59, %v2974_v60  ;;  %v2796_v59 = vld [vmem:[#allocation8 + $0x28] sm:$0xf]  ;;  %v3409_v60 = vld [vmem:[#allocation8 + $0x34] sm:$0xf0] }
  0xe7   :  { %v425_v16 = vmax.f32 %v385_v11, 0.0  ;;  %v2828_v11 = vld [vmem:[#allocation8 + $0x68] sm:$0xf]  ;;  %v2797_v4 = vor.u32 %v3409_v60, %v2796_v59 }
  0xe8   :  { %1212 = vmatpush.bf16.msrb.mxu1 %v2977_v61  ;;  %1164 = vmatpush.bf16.msra.mxu0 %v2833_v26  ;;  %v3407_v61 = vld [vmem:[#allocation8 + $0x2c] sm:$0xf]  ;;  %v3441_v26 = vld [vmem:[#allocation8 + $0x134] sm:$0xf0] }
  0xe9   :  { %v370_v57 = vpop.f32.mrf.mxu3  ;;  %v2925_v27 = vor.u32 %v3441_v26, %v2924_v25  ;;  %v3276_v26 = vld [vmem:[#allocation11 + $0x1f0] sm:$0xf] }
  0xea   :  { %v371_v28 = vadd.f32 %v370_v57, %v4011_v20 }
  0xec   :  { %v386_v12 = vpop.f32.mrf.mxu1  ;;  %1213 = vmatpush.bf16.msrb.mxu1 %v2961_v29 }
  0xed   :  { %v387_v14 = vadd.f32 %v386_v12, %v4030_v1  ;;  %v3417_v12 = vld [vmem:[#allocation8 + $0x74] sm:$0xf0] }
  0xee   :  { %v2829_v13 = vor.u32 %v3417_v12, %v2828_v11  ;;  %v2780_v11 = vld [vmem:[#allocation8 + $0x8] sm:$0xf]  ;;  %v3405_v12 = vld [vmem:[#allocation8 + $0x14] sm:$0xf0] }
  0xef   :  { %v427_v17 = vmax.f32 %v387_v14, 0.0 }
  0xf0   :  { %1066 = vmatpush.bf16.msra.mxu2 %v2829_v13  ;;  %1214 = vmatpush.bf16.msrb.mxu1 %v2945_v2  ;;  %v3403_v13 = vld [vmem:[#allocation8 + $0xc] sm:$0xf] }
  0xf1   :  { %v4039_v19 = vpack.c.bf16 %v427_v17, %v425_v16  ;;  %v2956_v16 = vld [vmem:[#allocation8 + $0x168] sm:$0xf]  ;;  %v3449_v17 = vld [vmem:[#allocation8 + $0x174] sm:$0xf0]  ;;  %v372_v24 = vpop.f32.mrf.mxu3 }
  0xf2   :  { %v2957_v21 = vor.u32 %v3449_v17, %v2956_v16  ;;  %v2781_v17 = vor.u32 %v3405_v12, %v2780_v11  ;;  %v373_v29 = vadd.f32 %v372_v24, %v4011_v20  ;;  %v4128_v24 = vld [vmem:[#allocation10] sm:$0xf] }
  0xf3   :  { %884 = vmatmul.bf16.gmra.mxu2 %v4037_v18  ;;  %923 = vmatmul.bf16.vlgmr.msrb.gmra.mxu3 %v4039_v19 }
  0xf4   :  { %982 = vmatmul.bf16.gmra.mxu0 %v4037_v18  ;;  %1021 = vmatmul.bf16.vlgmr.msra.gmra.mxu1 %v4039_v19  ;;  %v389_v58 = vpop.f32.mrf.mxu1 }
  0xf5   :  { %v390_v36 = vadd.f32 %v389_v58, %v4030_v1  ;;  %v363_v58 = vadd.f32 %v362_v15, %v4011_v20  ;;  %1115 = vmatpush.bf16.msra.mxu3 %v2957_v21  ;;  %v2782_v21 = vld [vmem:[#allocation8 + $0x18] sm:$0xf0] }
  0xf6   :  { %v2785_v22 = vor.u32 %v3403_v13, %v2782_v21  ;;  %v3513_v21 = vld [vmem:[#allocation11 + $0x174] sm:$0xf0] }
  0xf7   :  { %v429_v42 = vmax.f32 %v390_v36, 0.0  ;;  %v446_v32 = vmax.f32 %v363_v58, 0.0 }
  0xf9   :  { %v4074_v36 = vpack.c.bf16 %v446_v32, %v444_v30  ;;  %1116 = vmatpush.bf16.msra.mxu3 %v2941_v50  ;;  %v3439_v30 = vld [vmem:[#allocation8 + $0x12c] sm:$0xf]  ;;  %v2909_v50 = vor.u32 %v3437_v49, %v2908_v47  ;;  %v3204_v47 = vld [vmem:[#allocation11 + $0x160] sm:$0xf] }
  0xfa   :  { %v3511_v49 = vld [vmem:[#allocation11 + $0x164] sm:$0xf0] }
  0xfc   :  { %v391_v37 = vpop.f32.mrf.mxu1 }
  0xfd   :  { %v392_v39 = vadd.f32 %v391_v37, %v4030_v1  ;;  %1117 = vmatpush.bf16.msra.mxu3 %v2925_v27  ;;  %v3529_v27 = vld [vmem:[#allocation11 + $0x1f4] sm:$0xf0] }
  0xff   :  { %v431_v43 = vmax.f32 %v392_v39, 0.0 }
 0x101   :  { %v4052_v46 = vpack.c.bf16 %v431_v43, %v429_v42  ;;  %v3413_v42 = vld [vmem:[#allocation8 + $0x54] sm:$0xf0]  ;;  %1118 = vmatpush.bf16.msra.mxu3 %v2909_v50 }
 0x102   :  { %v2813_v43 = vor.u32 %v3413_v42, %v2812_v41 }
 0x103   :  { %889 = vmatmul.bf16.gmra.mxu2 %v4050_v45  ;;  %928 = vmatmul.bf16.gmra.mxu3 %v4052_v46 }
 0x104   :  { %987 = vmatmul.bf16.gmra.mxu0 %v4050_v45  ;;  %1026 = vmatmul.bf16.gmra.mxu1 %v4052_v46  ;;  %v394_v40 = vpop.f32.mrf.mxu1 }
 0x105   :  { %v395_v3 = vadd.f32 %v394_v40, %v4030_v1  ;;  %1067 = vmatpush.bf16.msra.mxu2 %v2813_v43  ;;  %v3411_v40 = vld [vmem:[#allocation8 + $0x4c] sm:$0xf] }
 0x106   :  { %v2817_v54 = vor.u32 %v3411_v40, %v2814_v51  ;;  %v3435_v40 = vld [vmem:[#allocation8 + $0x10c] sm:$0xf]  ;;  %v2910_v51 = vld [vmem:[#allocation8 + $0x118] sm:$0xf0] }
 0x107   :  { %v433_v7 = vmax.f32 %v395_v3, 0.0  ;;  %v450_v3 = vmax.f32 %v368_v53, 0.0  ;;  %v2913_v52 = vor.u32 %v3435_v40, %v2910_v51  ;;  %v3205_v40 = vor.u32 %v3511_v49, %v3204_v47 }
 0x108   :  { %1165 = vmatpush.bf16.msra.mxu0 %v2817_v54 }
 0x109   :  { %1068 = vmatpush.bf16.msra.mxu2 %v2797_v4  ;;  %v4086_v15 = vpack.c.bf16 %v450_v3, %v448_v63 }
 0x10c   :  { %v396_v5 = vpop.f32.mrf.mxu1 }
 0x10d   :  { %v397_v6 = vadd.f32 %v396_v5, %v4030_v1  ;;  %v2798_v5 = vld [vmem:[#allocation8 + $0x38] sm:$0xf0]  ;;  %1069 = vmatpush.bf16.msra.mxu2 %v2781_v17 }
 0x10f   :  { %v435_v9 = vmax.f32 %v397_v6, 0.0 }
 0x111   :  { %v4064_v10 = vpack.c.bf16 %v435_v9, %v433_v7  ;;  %v2801_v7 = vor.u32 %v3407_v61, %v2798_v5 }
 0x113   :  { %894 = vmatmul.bf16.gmra.mxu2 %v4062_v8  ;;  %933 = vmatmul.bf16.gmra.mxu3 %v4064_v10 }
 0x114   :  { %992 = vmatmul.bf16.gmra.mxu0 %v4062_v8  ;;  %1031 = vmatmul.bf16.gmra.mxu1 %v4064_v10  ;;  %v399_v14 = vpop.f32.mrf.mxu1 }
 0x115   :  { %v400_v31 = vadd.f32 %v399_v14, %v4030_v1  ;;  %1166 = vmatpush.bf16.msra.mxu0 %v2801_v7  ;;  %v3481_v7 = vld [vmem:[#allocation11 + $0x74] sm:$0xf0] }
 0x117   :  { %v437_v62 = vmax.f32 %v400_v31, 0.0  ;;  %v2926_v31 = vld [vmem:[#allocation8 + $0x138] sm:$0xf0] }
 0x118   :  { %v2929_v32 = vor.u32 %v3439_v30, %v2926_v31  ;;  %v3076_v30 = vld [vmem:[#allocation11 + $0x60] sm:$0xf]  ;;  %v3479_v31 = vld [vmem:[#allocation11 + $0x64] sm:$0xf0] }
 0x119   :  { %1167 = vmatpush.bf16.msra.mxu0 %v2785_v22 }
 0x11a   :  { %1215 = vmatpush.bf16.msrb.mxu1 %v2929_v32  ;;  %v3077_v32 = vor.u32 %v3479_v31, %v3076_v30  ;;  %v3509_v30 = vld [vmem:[#allocation11 + $0x154] sm:$0xf0] }
 0x11c   :  { %v401_v33 = vpop.f32.mrf.mxu1 }
 0x11d   :  { %v402_v34 = vadd.f32 %v401_v33, %v4030_v1  ;;  %v452_v33 = vmax.f32 %v371_v28, 0.0  ;;  %v3277_v28 = vor.u32 %v3529_v27, %v3276_v26 }
 0x11e   :  { %1216 = vmatpush.bf16.msrb.mxu1 %v2913_v52 }
 0x11f   :  { %v439_v37 = vmax.f32 %v402_v34, 0.0 }
 0x121   :  { %v4076_v39 = vpack.c.bf16 %v439_v37, %v437_v62  ;;  %v454_v62 = vmax.f32 %v373_v29, 0.0  ;;  %v4133_v29 = vperm.slane %v4128_v24, 1 }
 0x122   :  { %1891 = vmatpush.bf16.msra.mxu1 %v3277_v28  ;;  %v3196_v28 = vld [vmem:[#allocation11 + $0x150] sm:$0xf] }
 0x123   :  { %899 = vmatmul.bf16.gmra.mxu2 %v4074_v36  ;;  %938 = vmatmul.bf16.gmra.mxu3 %v4076_v39  ;;  %v4098_v42 = vpack.c.bf16 %v454_v62, %v452_v33  ;;  %v3495_v33 = vld [vmem:[#allocation11 + $0xe4] sm:$0xf0]  ;;  %v3197_v31 = vor.u32 %v3509_v30, %v3196_v28 }
 0x124   :  { %997 = vmatmul.bf16.gmra.mxu0 %v4074_v36  ;;  %1036 = vmatmul.bf16.gmra.mxu1 %v4076_v39  ;;  %v404_v44 = vpop.f32.mrf.mxu1 }
 0x125   :  { %v405_v0 = vadd.f32 %v404_v44, %v4030_v1 }
 0x127   :  { %v441_v14 = vmax.f32 %v405_v0, 0.0 }
 0x12c   :  { %v406_v6 = vpop.f32.mrf.mxu1 }
 0x12d   :  { %v407_v9 = vadd.f32 %v406_v6, %v4030_v1  ;;  %v3084_v6 = vld [vmem:[#allocation11 + $0x70] sm:$0xf] }
 0x12e   :  { %v3085_v13 = vor.u32 %v3481_v7, %v3084_v6  ;;  %v3132_v7 = vld [vmem:[#allocation11 + $0xd0] sm:$0xf] }
 0x12f   :  { %v443_v16 = vmax.f32 %v407_v9, 0.0  ;;  %v3148_v9 = vld [vmem:[#allocation11 + $0xf0] sm:$0xf] }
 0x130   :  { %1744 = vmatpush.bf16.msrb.mxu2 %v3085_v13 }
 0x131   :  { %v4088_v23 = vpack.c.bf16 %v443_v16, %v441_v14  ;;  %v3497_v14 = vld [vmem:[#allocation11 + $0xf4] sm:$0xf0] }
 0x133   :  { %904 = vmatmul.bf16.gmra.mxu2 %v4086_v15  ;;  %943 = vmatmul.bf16.gmra.mxu3 %v4088_v23 }
 0x134   :  { %1002 = vmatmul.bf16.gmra.mxu0 %v4086_v15  ;;  %1041 = vmatmul.bf16.gmra.mxu1 %v4088_v23  ;;  %v409_v58 = vpop.f32.mrf.mxu1 }
 0x135   :  { %v410_v34 = vadd.f32 %v409_v58, %v4030_v1  ;;  %1745 = vmatpush.bf16.msrb.mxu2 %v3077_v32 }
 0x137   :  { %v445_v41 = vmax.f32 %v410_v34, 0.0 }
 0x13c   :  { %v411_v37 = vpop.f32.mrf.mxu1 }
 0x13d   :  { %v412_v38 = vadd.f32 %v411_v37, %v4030_v1 }
 0x13f   :  { %v447_v43 = vmax.f32 %v412_v38, 0.0  ;;  %v4139_v38 = vperm.slane %v4128_v24, 0 }
 0x141   :  { %v4100_v44 = vpack.c.bf16 %v447_v43, %v445_v41 }
 0x143   :  { %909 = vmatmul.bf16.gmra.mxu2 %v4098_v42  ;;  %948 = vmatmul.bf16.gmra.mxu3 %v4100_v44 }
 0x144   :  { %1007 = vmatmul.bf16.gmra.mxu0 %v4098_v42  ;;  %1046 = vmatmul.bf16.gmra.mxu1 %v4100_v44  ;;  %v414_v20 = vpop.f32.mrf.mxu1 }
 0x145   :  { %v415_v53 = vadd.f32 %v414_v20, %v4030_v1 }
 0x147   :  { %v449_v56 = vmax.f32 %v415_v53, 0.0 }
 0x14c   :  { %v416_v54 = vpop.f32.mrf.mxu1 }
 0x14d   :  { %v417_v55 = vadd.f32 %v416_v54, %v4030_v1 }
 0x14f   :  { %v451_v2 = vmax.f32 %v417_v55, 0.0 }
 0x150   :  { %v973_v57 = vpop.f32.mrf.mxu0 }
 0x151   :  { %v4108_v59 = vpack.c.bf16 %v451_v2, %v449_v56  ;;  %v974_v37 = vadd.f32 %v973_v57, %v4133_v29  ;;  %v3268_v2 = vld [vmem:[#allocation11 + $0x1e0] sm:$0xf]  ;;  %v3527_v57 = vld [vmem:[#allocation11 + $0x1e4] sm:$0xf0] }
 0x153   :  { %953 = vmatmul.bf16.gmra.mxu3 %v4108_v59  ;;  %1070 = vmatmul.bf16.vlgmr.msra.gmra.mxu2 %v4016_v35 }
 0x154   :  { %1051 = vmatmul.bf16.gmra.mxu1 %v4108_v59  ;;  %1168 = vmatmul.bf16.vlgmr.msra.gmra.mxu0 %v4016_v35  ;;  %v419_v60 = vpop.f32.mrf.mxu1  ;;  %v3149_v35 = vor.u32 %v3497_v14, %v3148_v9  ;;  %v3493_v9 = vld [vmem:[#allocation11 + $0xd4] sm:$0xf0] }
 0x155   :  { %v420_v0 = vadd.f32 %v419_v60, %v4030_v1  ;;  %v3269_v60 = vor.u32 %v3527_v57, %v3268_v2  ;;  %v3133_v13 = vor.u32 %v3493_v9, %v3132_v7  ;;  %v3188_v7 = vld [vmem:[#allocation11 + $0x140] sm:$0xf]  ;;  %v3507_v9 = vld [vmem:[#allocation11 + $0x144] sm:$0xf0] }
 0x156   :  { %v875_v61 = vpop.f32.mrf.mxu2  ;;  %1793 = vmatpush.bf16.msrb.mxu3 %v3149_v35 }
 0x157   :  { %v453_v11 = vmax.f32 %v420_v0, 0.0  ;;  %v876_v50 = vadd.f32 %v875_v61, %v4139_v38  ;;  %1892 = vmatpush.bf16.msra.mxu1 %v3269_v60  ;;  %v3477_v61 = vld [vmem:[#allocation11 + $0x54] sm:$0xf0] }
 0x158   :  { %v975_v63 = vpop.f32.mrf.mxu0 }
 0x159   :  { %v976_v54 = vadd.f32 %v975_v63, %v4133_v29 }
 0x15c   :  { %v421_v3 = vpop.f32.mrf.mxu1 }
 0x15d   :  { %v422_v4 = vadd.f32 %v421_v3, %v4030_v1  ;;  %v3212_v1 = vld [vmem:[#allocation11 + $0x170] sm:$0xf] }
 0x15e   :  { %v4116_v5 = vpop.f32.mrf.mxu2  ;;  %v3213_v22 = vor.u32 %v3513_v21, %v3212_v1  ;;  %v3068_v3 = vld [vmem:[#allocation11 + $0x50] sm:$0xf] }
 0x15f   :  { %v455_v12 = vmax.f32 %v422_v4, 0.0  ;;  %v878_v4 = vadd.f32 %v4116_v5, %v4139_v38  ;;  %v3069_v6 = vor.u32 %v3477_v61, %v3068_v3 }
 0x160   :  { %v4118_v16 = vpop.f32.mrf.mxu0  ;;  %1842 = vmatpush.bf16.msrb.mxu0 %v3213_v22 }
 0x161   :  { %v4120_v17 = vpack.c.bf16 %v455_v12, %v453_v11  ;;  %1746 = vmatpush.bf16.msrb.mxu2 %v3069_v6  ;;  %v979_v35 = vadd.f32 %v4118_v16, %v4133_v29 }
 0x163   :  { %958 = vmatmul.bf16.gmra.mxu3 %v4120_v17  ;;  %1075 = vmatmul.bf16.gmra.mxu2 %v4025_v48 }
 0x164   :  { %1056 = vmatmul.bf16.gmra.mxu1 %v4120_v17  ;;  %1173 = vmatmul.bf16.gmra.mxu0 %v4025_v48  ;;  %v3140_v48 = vld [vmem:[#allocation11 + $0xe0] sm:$0xf] }
 0x165   :  { %v3141_v62 = vor.u32 %v3495_v33, %v3140_v48  ;;  %1843 = vmatpush.bf16.msrb.mxu0 %v3205_v40  ;;  %v3475_v40 = vld [vmem:[#allocation11 + $0x44] sm:$0xf0] }
 0x166   :  { %v4126_v58 = vpop.f32.mrf.mxu2 }
 0x167   :  { %1794 = vmatpush.bf16.msrb.mxu3 %v3141_v62  ;;  %v881_v16 = vadd.f32 %v4126_v58, %v4139_v38  ;;  %v3060_v58 = vld [vmem:[#allocation11 + $0x40] sm:$0xf] }
 0x168   :  { %v4130_v25 = vpop.f32.mrf.mxu0 }
 0x169   :  { %1844 = vmatpush.bf16.msrb.mxu0 %v3197_v31  ;;  %v981_v62 = vadd.f32 %v4130_v25, %v4133_v29  ;;  %v3473_v31 = vld [vmem:[#allocation11 + $0x34] sm:$0xf0] }
 0x16b   :  { %1795 = vmatpush.bf16.msrb.mxu3 %v3133_v13 }
 0x16e   :  { %v4135_v34 = vpop.f32.mrf.mxu2 }
 0x171   :  { %v4141_v41 = vpop.f32.mrf.mxu0  ;;  %v1022_v43 = vpop.f32.mrf.mxu1 }
 0x172   :  { %v1023_v20 = vadd.f32 %v1022_v43, %v974_v37 }
 0x173   :  { %1080 = vmatmul.bf16.gmra.mxu2 %v4037_v18  ;;  %1119 = vmatmul.bf16.vlgmr.msra.gmra.mxu3 %v4039_v19 }
 0x174   :  { %1178 = vmatmul.bf16.gmra.mxu0 %v4037_v18  ;;  %1217 = vmatmul.bf16.vlgmr.msrb.gmra.mxu1 %v4039_v19  ;;  %v1259_v19 = vmax.f32 %v1023_v20, 0.0  ;;  %v3525_v20 = vld [vmem:[#allocation11 + $0x1d4] sm:$0xf0] }
 0x176   :  { %v4148_v51 = vpop.f32.mrf.mxu2  ;;  %v924_v52 = vpop.f32.mrf.mxu3 }
 0x177   :  { %v925_v53 = vadd.f32 %v924_v52, %v876_v50  ;;  %v883_v52 = vadd.f32 %v4135_v34, %v4139_v38 }
 0x179   :  { %v4151_v55 = vpop.f32.mrf.mxu0  ;;  %v1024_v56 = vpop.f32.mrf.mxu1  ;;  %v1258_v1 = vmax.f32 %v925_v53, 0.0  ;;  %v3061_v53 = vor.u32 %v3475_v40, %v3060_v58 }
 0x17a   :  { %v1025_v18 = vadd.f32 %v1024_v56, %v976_v54  ;;  %v3124_v54 = vld [vmem:[#allocation11 + $0xc0] sm:$0xf]  ;;  %v3491_v56 = vld [vmem:[#allocation11 + $0xc4] sm:$0xf0] }
 0x17b   :  { %v3125_v57 = vor.u32 %v3491_v56, %v3124_v54  ;;  %1747 = vmatpush.bf16.msrb.mxu2 %v3061_v53  ;;  %v3180_v54 = vld [vmem:[#allocation11 + $0x130] sm:$0xf]  ;;  %v3505_v56 = vld [vmem:[#allocation11 + $0x134] sm:$0xf0] }
 0x17c   :  { %v1263_v0 = vmax.f32 %v1025_v18, 0.0 }
 0x17d   :  { %1796 = vmatpush.bf16.msrb.mxu3 %v3125_v57 }
 0x17e   :  { %v4155_v11 = vpack.c.bf16 %v1263_v0, %v1259_v19  ;;  %v4157_v63 = vpop.f32.mrf.mxu2  ;;  %v926_v12 = vpop.f32.mrf.mxu3  ;;  %v984_v19 = vadd.f32 %v4141_v41, %v4133_v29  ;;  %v886_v41 = vadd.f32 %v4148_v51, %v4139_v38  ;;  %v3052_v51 = vld [vmem:[#allocation11 + $0x30] sm:$0xf] }
 0x17f   :  { %v927_v14 = vadd.f32 %v926_v12, %v878_v4  ;;  %v3189_v12 = vor.u32 %v3507_v9, %v3188_v7  ;;  %v3244_v7 = vld [vmem:[#allocation11 + $0x1b0] sm:$0xf]  ;;  %v3521_v9 = vld [vmem:[#allocation11 + $0x1b4] sm:$0xf0] }
 0x181   :  { %v1262_v21 = vmax.f32 %v927_v14, 0.0  ;;  %v4161_v22 = vpop.f32.mrf.mxu0  ;;  %v1027_v5 = vpop.f32.mrf.mxu1  ;;  %1845 = vmatpush.bf16.msrb.mxu0 %v3189_v12  ;;  %v3036_v12 = vld [vmem:[#allocation11 + $0x10] sm:$0xf] }
 0x182   :  { %v1028_v26 = vadd.f32 %v1027_v5, %v979_v35 }
 0x183   :  { %v4163_v27 = vpack.c.bf16 %v1262_v21, %v1258_v1  ;;  %1085 = vmatmul.bf16.gmra.mxu2 %v4050_v45  ;;  %1124 = vmatmul.bf16.gmra.mxu3 %v4052_v46  ;;  %v986_v1 = vadd.f32 %v4151_v55, %v4133_v29 }
 0x184   :  { %1183 = vmatmul.bf16.gmra.mxu0 %v4050_v45  ;;  %1222 = vmatmul.bf16.gmra.mxu1 %v4052_v46  ;;  %v3260_v45 = vld [vmem:[#allocation11 + $0x1d0] sm:$0xf]  ;;  %v1267_v49 = vmax.f32 %v1028_v26, 0.0  ;;  %v3523_v26 = vld [vmem:[#allocation11 + $0x1c4] sm:$0xf0] }
 0x185   :  { %v3261_v47 = vor.u32 %v3525_v20, %v3260_v45 }
 0x186   :  { %v4171_v48 = vpop.f32.mrf.mxu2  ;;  %v929_v32 = vpop.f32.mrf.mxu3 }
 0x187   :  { %v930_v33 = vadd.f32 %v929_v32, %v881_v16  ;;  %1893 = vmatpush.bf16.msra.mxu1 %v3261_v47  ;;  %v888_v32 = vadd.f32 %v4157_v63, %v4139_v38 }
 0x189   :  { %v4175_v37 = vpop.f32.mrf.mxu0  ;;  %v1029_v43 = vpop.f32.mrf.mxu1  ;;  %v1266_v0 = vmax.f32 %v930_v33, 0.0  ;;  %v3053_v33 = vor.u32 %v3473_v31, %v3052_v51  ;;  %v3467_v51 = vld [vmem:[#allocation11 + $0x4] sm:$0xf0] }
 0x18a   :  { %v1030_v46 = vadd.f32 %v1029_v43, %v981_v62  ;;  %v3116_v62 = vld [vmem:[#allocation11 + $0xb0] sm:$0xf]  ;;  %v3489_v43 = vld [vmem:[#allocation11 + $0xb4] sm:$0xf0] }
 0x18b   :  { %v3117_v20 = vor.u32 %v3489_v43, %v3116_v62  ;;  %1748 = vmatpush.bf16.msrb.mxu2 %v3053_v33 }
 0x18c   :  { %v1271_v50 = vmax.f32 %v1030_v46, 0.0 }
 0x18d   :  { %1797 = vmatpush.bf16.msrb.mxu3 %v3117_v20 }
 0x18e   :  { %v4179_v2 = vpop.f32.mrf.mxu2  ;;  %v931_v25 = vpop.f32.mrf.mxu3  ;;  %v4181_v18 = vpack.c.bf16 %v1271_v50, %v1267_v49  ;;  %v989_v49 = vadd.f32 %v4161_v22, %v4133_v29  ;;  %v891_v22 = vadd.f32 %v4171_v48, %v4139_v38  ;;  %v3245_v48 = vor.u32 %v3521_v9, %v3244_v7 }
 0x18f   :  { %v932_v60 = vadd.f32 %v931_v25, %v883_v52  ;;  %v3181_v25 = vor.u32 %v3505_v56, %v3180_v54 }
 0x191   :  { %v1270_v3 = vmax.f32 %v932_v60, 0.0  ;;  %v4185_v61 = vpop.f32.mrf.mxu0  ;;  %v1032_v34 = vpop.f32.mrf.mxu1  ;;  %1846 = vmatpush.bf16.msrb.mxu0 %v3181_v25 }
 0x192   :  { %v1033_v4 = vadd.f32 %v1032_v34, %v984_v19  ;;  %v3044_v19 = vld [vmem:[#allocation11 + $0x20] sm:$0xf]  ;;  %v994_v62 = vadd.f32 %v4185_v61, %v4133_v29  ;;  %v3503_v61 = vld [vmem:[#allocation11 + $0x124] sm:$0xf0] }
 0x193   :  { %1090 = vmatmul.bf16.gmra.mxu2 %v4062_v8  ;;  %1129 = vmatmul.bf16.gmra.mxu3 %v4064_v10  ;;  %v4189_v6 = vpack.c.bf16 %v1270_v3, %v1266_v0  ;;  %v3471_v0 = vld [vmem:[#allocation11 + $0x24] sm:$0xf0] }
 0x194   :  { %1188 = vmatmul.bf16.gmra.mxu0 %v4062_v8  ;;  %1227 = vmatmul.bf16.gmra.mxu1 %v4064_v10  ;;  %v3252_v8 = vld [vmem:[#allocation11 + $0x1c0] sm:$0xf]  ;;  %v1275_v30 = vmax.f32 %v1033_v4, 0.0  ;;  %v3045_v34 = vor.u32 %v3471_v0, %v3044_v19  ;;  %v991_v4 = vadd.f32 %v4175_v37, %v4133_v29  ;;  %v3519_v19 = vld [vmem:[#allocation11 + $0x1a4] sm:$0xf0] }
 0x195   :  { %v3253_v28 = vor.u32 %v3523_v26, %v3252_v8  ;;  %v3108_v8 = vld [vmem:[#allocation11 + $0xa0] sm:$0xf]  ;;  %v3487_v26 = vld [vmem:[#allocation11 + $0xa4] sm:$0xf0]  ;;  %v3485_v0 = vld [vmem:[#allocation11 + $0x94] sm:$0xf0] }
 0x196   :  { %v4195_v13 = vpop.f32.mrf.mxu2  ;;  %v934_v14 = vpop.f32.mrf.mxu3  ;;  %1749 = vmatpush.bf16.msrb.mxu2 %v3045_v34  ;;  %v3109_v37 = vor.u32 %v3487_v26, %v3108_v8 }
 0x197   :  { %v935_v35 = vadd.f32 %v934_v14, %v886_v41  ;;  %1894 = vmatpush.bf16.msra.mxu1 %v3253_v28  ;;  %v3469_v14 = vld [vmem:[#allocation11 + $0x14] sm:$0xf0] }
 0x198   :  { %1798 = vmatpush.bf16.msrb.mxu3 %v3109_v37 }
 0x199   :  { %v4199_v21 = vpop.f32.mrf.mxu0  ;;  %v1034_v5 = vpop.f32.mrf.mxu1  ;;  %v1274_v50 = vmax.f32 %v935_v35, 0.0  ;;  %v3037_v35 = vor.u32 %v3469_v14, %v3036_v12 }
 0x19a   :  { %v1035_v10 = vadd.f32 %v1034_v5, %v986_v1 }
 0x19b   :  { %1895 = vmatpush.bf16.msra.mxu1 %v3245_v48  ;;  %1750 = vmatpush.bf16.msrb.mxu2 %v3037_v35  ;;  %v3164_v35 = vld [vmem:[#allocation11 + $0x110] sm:$0xf] }
 0x19c   :  { %v1279_v16 = vmax.f32 %v1035_v10, 0.0  ;;  %v893_v10 = vadd.f32 %v4179_v2, %v4139_v38 }
 0x19e   :  { %v4203_v45 = vpop.f32.mrf.mxu2  ;;  %v936_v55 = vpop.f32.mrf.mxu3  ;;  %v4205_v46 = vpack.c.bf16 %v1279_v16, %v1275_v30  ;;  %v3028_v16 = vld [vmem:[#allocation11] sm:$0xf] }
 0x19f   :  { %v937_v47 = vadd.f32 %v936_v55, %v888_v32  ;;  %v3029_v33 = vor.u32 %v3467_v51, %v3028_v16  ;;  %v3228_v16 = vld [vmem:[#allocation11 + $0x190] sm:$0xf]  ;;  %v3517_v51 = vld [vmem:[#allocation11 + $0x194] sm:$0xf0] }
 0x1a1   :  { %v1278_v58 = vmax.f32 %v937_v47, 0.0  ;;  %v4209_v40 = vpop.f32.mrf.mxu0  ;;  %v1037_v63 = vpop.f32.mrf.mxu1  ;;  %1751 = vmatpush.bf16.msrb.mxu2 %v3029_v33 }
 0x1a2   :  { %v1038_v52 = vadd.f32 %v1037_v63, %v989_v49  ;;  %v999_v7 = vadd.f32 %v4209_v40, %v4133_v29 }
 0x1a3   :  { %1095 = vmatmul.bf16.gmra.mxu2 %v4074_v36  ;;  %1134 = vmatmul.bf16.gmra.mxu3 %v4076_v39  ;;  %v4213_v53 = vpack.c.bf16 %v1278_v58, %v1274_v50  ;;  %v3172_v50 = vld [vmem:[#allocation11 + $0x120] sm:$0xf]  ;;  %v896_v58 = vadd.f32 %v4195_v13, %v4139_v38 }
 0x1a4   :  { %1193 = vmatmul.bf16.gmra.mxu0 %v4074_v36  ;;  %1232 = vmatmul.bf16.gmra.mxu1 %v4076_v39  ;;  %v1283_v1 = vmax.f32 %v1038_v52, 0.0  ;;  %v3173_v63 = vor.u32 %v3503_v61, %v3172_v50 }
 0x1a6   :  { %v4219_v57 = vpop.f32.mrf.mxu2  ;;  %v939_v60 = vpop.f32.mrf.mxu3  ;;  %1847 = vmatpush.bf16.msrb.mxu0 %v3173_v63 }
 0x1a7   :  { %v940_v3 = vadd.f32 %v939_v60, %v891_v22  ;;  %v3236_v60 = vld [vmem:[#allocation11 + $0x1a0] sm:$0xf]  ;;  %v901_v40 = vadd.f32 %v4219_v57, %v4139_v38 }
 0x1a9   :  { %v4223_v36 = vpop.f32.mrf.mxu0  ;;  %v1039_v39 = vpop.f32.mrf.mxu1  ;;  %v1282_v43 = vmax.f32 %v940_v3, 0.0  ;;  %v898_v3 = vadd.f32 %v4203_v45, %v4139_v38 }
 0x1aa   :  { %v1040_v41 = vadd.f32 %v1039_v39, %v991_v4 }
 0x1ac   :  { %v1287_v5 = vmax.f32 %v1040_v41, 0.0 }
 0x1ae   :  { %v4227_v28 = vpop.f32.mrf.mxu2  ;;  %v941_v30 = vpop.f32.mrf.mxu3  ;;  %v4229_v31 = vpack.c.bf16 %v1287_v5, %v1283_v1  ;;  %v3501_v1 = vld [vmem:[#allocation11 + $0x114] sm:$0xf0] }
 0x1af   :  { %v942_v32 = vadd.f32 %v941_v30, %v893_v10  ;;  %v3165_v5 = vor.u32 %v3501_v1, %v3164_v35  ;;  %v903_v33 = vadd.f32 %v4227_v28, %v4139_v38  ;;  %v3496_v35 = vld [vmem:[#allocation11 + $0xf4] sm:$0xf] }
 0x1b1   :  { %v1286_v55 = vmax.f32 %v942_v32, 0.0  ;;  %v4233_v20 = vpop.f32.mrf.mxu0  ;;  %v1042_v2 = vpop.f32.mrf.mxu1  ;;  %1848 = vmatpush.bf16.msrb.mxu0 %v3165_v5  ;;  %v3483_v32 = vld [vmem:[#allocation11 + $0x84] sm:$0xf0]  ;;  %v3150_v5 = vld [vmem:[#allocation11 + $0xf8] sm:$0xf0] }
 0x1b2   :  { %v4235_v47 = vadd.f32 %v1042_v2, %v994_v62  ;;  %v1004_v2 = vadd.f32 %v4233_v20, %v4133_v29 }
 0x1b3   :  { %1100 = vmatmul.bf16.gmra.mxu2 %v4086_v15  ;;  %1139 = vmatmul.bf16.gmra.mxu3 %v4088_v23  ;;  %v4239_v49 = vpack.c.bf16 %v1286_v55, %v1282_v43 }
 0x1b4   :  { %1198 = vmatmul.bf16.gmra.mxu0 %v4086_v15  ;;  %1237 = vmatmul.bf16.gmra.mxu1 %v4088_v23  ;;  %v3237_v15 = vor.u32 %v3519_v19, %v3236_v60  ;;  %v3100_v23 = vld [vmem:[#allocation11 + $0x90] sm:$0xf]  ;;  %v3499_v60 = vld [vmem:[#allocation11 + $0x104] sm:$0xf0] }
 0x1b5   :  { %v3101_v13 = vor.u32 %v3485_v0, %v3100_v23 }
 0x1b6   :  { %v4245_v52 = vpop.f32.mrf.mxu2  ;;  %v944_v54 = vpop.f32.mrf.mxu3  ;;  %1896 = vmatpush.bf16.msra.mxu1 %v3237_v15 }
 0x1b7   :  { %v945_v56 = vadd.f32 %v944_v54, %v896_v58  ;;  %1799 = vmatpush.bf16.msrb.mxu3 %v3101_v13  ;;  %v906_v20 = vadd.f32 %v4245_v52, %v4139_v38  ;;  %v3480_v52 = vld [vmem:[#allocation11 + $0x74] sm:$0xf] }
 0x1b9   :  { %v4247_v22 = vpop.f32.mrf.mxu0  ;;  %v4249_v25 = vpop.f32.mrf.mxu1  ;;  %v1290_v9 = vmax.f32 %v945_v56, 0.0  ;;  %v3156_v56 = vld [vmem:[#allocation11 + $0x100] sm:$0xf] }
 0x1ba   :  { %v3157_v19 = vor.u32 %v3499_v60, %v3156_v56  ;;  %v3278_v56 = vld [vmem:[#allocation11 + $0x1f8] sm:$0xf0] }
 0x1bc   :  { %1849 = vmatpush.bf16.msrb.mxu0 %v3157_v19  ;;  %v3078_v19 = vld [vmem:[#allocation11 + $0x68] sm:$0xf0] }
 0x1be   :  { %v907_v34 = vpop.f32.mrf.mxu2  ;;  %v946_v4 = vpop.f32.mrf.mxu3 }
 0x1bf   :  { %v947_v39 = vadd.f32 %v946_v4, %v898_v3  ;;  %v3220_v4 = vld [vmem:[#allocation11 + $0x180] sm:$0xf] }
 0x1c1   :  { %v1294_v41 = vmax.f32 %v947_v39, 0.0  ;;  %v4255_v48 = vpop.f32.mrf.mxu0  ;;  %v1047_v12 = vpop.f32.mrf.mxu1  ;;  %v3515_v39 = vld [vmem:[#allocation11 + $0x184] sm:$0xf0] }
 0x1c2   :  { %v4257_v14 = vadd.f32 %v1047_v12, %v999_v7  ;;  %v3221_v7 = vor.u32 %v3515_v39, %v3220_v4  ;;  %v3086_v12 = vld [vmem:[#allocation11 + $0x78] sm:$0xf0]  ;;  %v3142_v4 = vld [vmem:[#allocation11 + $0xe8] sm:$0xf0] }
 0x1c3   :  { %1105 = vmatmul.bf16.gmra.mxu2 %v4098_v42  ;;  %1144 = vmatmul.bf16.gmra.mxu3 %v4100_v44  ;;  %v4261_v45 = vpack.c.bf16 %v1294_v41, %v1290_v9 }
 0x1c4   :  { %1203 = vmatmul.bf16.gmra.mxu0 %v4098_v42  ;;  %1242 = vmatmul.bf16.gmra.mxu1 %v4100_v44  ;;  %v3229_v42 = vor.u32 %v3517_v51, %v3228_v16  ;;  %v3092_v44 = vld [vmem:[#allocation11 + $0x80] sm:$0xf] }
 0x1c5   :  { %v3093_v57 = vor.u32 %v3483_v32, %v3092_v44 }
 0x1c6   :  { %v4267_v8 = vpop.f32.mrf.mxu2  ;;  %v949_v26 = vpop.f32.mrf.mxu3  ;;  %1897 = vmatpush.bf16.msra.mxu1 %v3229_v42 }
 0x1c7   :  { %v950_v10 = vadd.f32 %v949_v26, %v901_v40  ;;  %1800 = vmatpush.bf16.msrb.mxu3 %v3093_v57  ;;  %v3089_v40 = vor.u32 %v3480_v52, %v3086_v12  ;;  %v1009_v26 = vadd.f32 %v4255_v48, %v4133_v29  ;;  %v911_v48 = vadd.f32 %v4267_v8, %v4139_v38  ;;  %v3214_v57 = vld [vmem:[#allocation11 + $0x178] sm:$0xf0] }
 0x1c9   :  { %v4269_v37 = vpop.f32.mrf.mxu0  ;;  %v4271_v30 = vpop.f32.mrf.mxu1  ;;  %v1298_v50 = vmax.f32 %v950_v10, 0.0  ;;  %v3153_v10 = vor.u32 %v3496_v35, %v3150_v5  ;;  %1940 = vmatpush.bf16.msra.mxu2 %v3089_v40  ;;  %v3206_v40 = vld [vmem:[#allocation11 + $0x168] sm:$0xf0] }
 0x1ca   :  { %1898 = vmatpush.bf16.msra.mxu1 %v3221_v7 }
 0x1cb   :  { %1989 = vmatpush.bf16.msra.mxu3 %v3153_v10 }
 0x1ce   :  { %v4275_v62 = vpop.f32.mrf.mxu2  ;;  %v951_v43 = vpop.f32.mrf.mxu3 }
 0x1cf   :  { %v952_v55 = vadd.f32 %v951_v43, %v903_v33  ;;  %v3512_v33 = vld [vmem:[#allocation11 + $0x174] sm:$0xf] }
 0x1d1   :  { %v1302_v61 = vmax.f32 %v952_v55, 0.0  ;;  %v1052_v58 = vpop.f32.mrf.mxu1  ;;  %v4279_v63 = vpop.f32.mrf.mxu0 }
 0x1d2   :  { %v4281_v54 = vadd.f32 %v1052_v58, %v1004_v2  ;;  %v3217_v2 = vor.u32 %v3512_v33, %v3214_v57  ;;  %v3528_v58 = vld [vmem:[#allocation11 + $0x1f4] sm:$0xf] }
 0x1d3   :  { %1149 = vmatmul.bf16.gmra.mxu3 %v4108_v59  ;;  %1752 = vmatmul.bf16.vlgmr.msrb.gmra.mxu2 %v4163_v27  ;;  %v4285_v28 = vpack.c.bf16 %v1302_v61, %v1298_v50  ;;  %v3281_v60 = vor.u32 %v3528_v58, %v3278_v56 }
 0x1d4   :  { %1247 = vmatmul.bf16.gmra.mxu1 %v4108_v59  ;;  %v908_v59 = vadd.f32 %v907_v34, %v4139_v38  ;;  %2038 = vmatpush.bf16.msra.mxu0 %v3217_v2  ;;  %v3270_v2 = vld [vmem:[#allocation11 + $0x1e8] sm:$0xf0] }
 0x1d5   :  { %2087 = vmatpush.bf16.msrb.mxu1 %v3281_v60 }
 0x1d6   :  { %v954_v15 = vpop.f32.mrf.mxu3  ;;  %v4290_v23 = vpop.f32.mrf.mxu2 }
 0x1d7   :  { %v955_v0 = vadd.f32 %v954_v15, %v906_v20  ;;  %v3478_v20 = vld [vmem:[#allocation11 + $0x64] sm:$0xf] }
 0x1d8   :  { %v3081_v15 = vor.u32 %v3478_v20, %v3078_v19  ;;  %v3070_v20 = vld [vmem:[#allocation11 + $0x58] sm:$0xf0] }
 0x1d9   :  { %v4292_v3 = vpop.f32.mrf.mxu1  ;;  %v4294_v13 = vpop.f32.mrf.mxu0  ;;  %v1306_v16 = vmax.f32 %v955_v0, 0.0  ;;  %v3494_v0 = vld [vmem:[#allocation11 + $0xe4] sm:$0xf] }
 0x1da   :  { %1941 = vmatpush.bf16.msra.mxu2 %v3081_v15  ;;  %v3492_v15 = vld [vmem:[#allocation11 + $0xd4] sm:$0xf] }
 0x1de   :  { %v956_v9 = vpop.f32.mrf.mxu3  ;;  %v4297_v41 = vpop.f32.mrf.mxu2 }
 0x1df   :  { %v957_v1 = vadd.f32 %v956_v9, %v908_v59  ;;  %v3145_v59 = vor.u32 %v3494_v0, %v3142_v4  ;;  %v3134_v0 = vld [vmem:[#allocation11 + $0xd8] sm:$0xf0] }
 0x1e1   :  { %v1310_v51 = vmax.f32 %v957_v1, 0.0  ;;  %v1057_v42 = vpop.f32.mrf.mxu1  ;;  %v4303_v34 = vpop.f32.mrf.mxu0  ;;  %1990 = vmatpush.bf16.msra.mxu3 %v3145_v59  ;;  %v4323_v1 = vperm.slane %v4128_v24, 3 }
 0x1e2   :  { %v4301_v44 = vadd.f32 %v1057_v42, %v1009_v26 }
 0x1e3   :  { %1154 = vmatmul.bf16.gmra.mxu3 %v4120_v17  ;;  %1757 = vmatmul.bf16.gmra.mxu2 %v4189_v6  ;;  %v4307_v32 = vpack.c.bf16 %v1310_v51, %v1306_v16  ;;  %v1170_v5 = vadd.f32 %v4279_v63, %v4323_v1  ;;  %v4334_v51 = vperm.slane %v4128_v24, 2  ;;  %v3476_v24 = vld [vmem:[#allocation11 + $0x54] sm:$0xf] }
 0x1e4   :  { %1252 = vmatmul.bf16.gmra.mxu1 %v4120_v17  ;;  %v913_v17 = vadd.f32 %v4275_v62, %v4139_v38  ;;  %v3510_v62 = vld [vmem:[#allocation11 + $0x164] sm:$0xf] }
 0x1e5   :  { %v3209_v16 = vor.u32 %v3510_v62, %v3206_v40  ;;  %v1072_v63 = vadd.f32 %v4290_v23, %v4334_v51  ;;  %v1074_v19 = vadd.f32 %v4297_v41, %v4334_v51  ;;  %v3508_v40 = vld [vmem:[#allocation11 + $0x154] sm:$0xf] }
 0x1e6   :  { %v959_v43 = vpop.f32.mrf.mxu3  ;;  %v4312_v55 = vpop.f32.mrf.mxu2 }
 0x1e7   :  { %v960_v50 = vadd.f32 %v959_v43, %v911_v48  ;;  %v1172_v48 = vadd.f32 %v4294_v13, %v4323_v1  ;;  %2039 = vmatpush.bf16.msra.mxu0 %v3209_v16  ;;  %v3526_v43 = vld [vmem:[#allocation11 + $0x1e4] sm:$0xf]  ;;  %v3073_v13 = vor.u32 %v3476_v24, %v3070_v20 }
 0x1e8   :  { %v3273_v58 = vor.u32 %v3526_v43, %v3270_v2 }
 0x1e9   :  { %v4314_v61 = vpop.f32.mrf.mxu1  ;;  %v4318_v8 = vpop.f32.mrf.mxu0  ;;  %v1314_v52 = vmax.f32 %v960_v50, 0.0  ;;  %1942 = vmatpush.bf16.msra.mxu2 %v3073_v13 }
 0x1ea   :  { %2088 = vmatpush.bf16.msrb.mxu1 %v3273_v58  ;;  %v3262_v58 = vld [vmem:[#allocation11 + $0x1d8] sm:$0xf0] }
 0x1ee   :  { %v961_v39 = vpop.f32.mrf.mxu3  ;;  %v4320_v7 = vpop.f32.mrf.mxu2 }
 0x1ef   :  { %v962_v9 = vadd.f32 %v961_v39, %v913_v17 }
 0x1f1   :  { %v1318_v12 = vmax.f32 %v962_v9, 0.0  ;;  %v1218_v35 = vpop.f32.mrf.mxu1  ;;  %v4336_v42 = vpop.f32.mrf.mxu0  ;;  %v3137_v9 = vor.u32 %v3492_v15, %v3134_v0  ;;  %v3490_v0 = vld [vmem:[#allocation11 + $0xc4] sm:$0xf] }
 0x1f2   :  { %v1219_v33 = vadd.f32 %v1218_v35, %v1170_v5  ;;  %v3198_v5 = vld [vmem:[#allocation11 + $0x158] sm:$0xf0] }
 0x1f3   :  { %1762 = vmatmul.bf16.gmra.mxu2 %v4213_v53  ;;  %1801 = vmatmul.bf16.vlgmr.msrb.gmra.mxu3 %v4155_v11  ;;  %v4327_v38 = vpack.c.bf16 %v1318_v12, %v1314_v52 }
 0x1f4   :  { %v1261_v56 = vmax.f32 %v1219_v33, 0.0  ;;  %1991 = vmatpush.bf16.msra.mxu3 %v3137_v9  ;;  %v3201_v33 = vor.u32 %v3508_v40, %v3198_v5 }
 0x1f6   :  { %v4331_v26 = vpop.f32.mrf.mxu2  ;;  %v1120_v10 = vpop.f32.mrf.mxu3  ;;  %2040 = vmatpush.bf16.msra.mxu0 %v3201_v33  ;;  %v3190_v33 = vld [vmem:[#allocation11 + $0x148] sm:$0xf0] }
 0x1f7   :  { %v1121_v17 = vadd.f32 %v1120_v10, %v1072_v63  ;;  %v1175_v10 = vadd.f32 %v4303_v34, %v4323_v1 }
 0x1f9   :  { %v1220_v57 = vpop.f32.mrf.mxu1  ;;  %v1260_v23 = vmax.f32 %v1121_v17, 0.0  ;;  %v1181_v12 = vpop.f32.mrf.mxu0  ;;  %v3062_v17 = vld [vmem:[#allocation11 + $0x48] sm:$0xf0] }
 0x1fa   :  { %v1221_v50 = vadd.f32 %v1220_v57, %v1172_v48  ;;  %v1177_v57 = vadd.f32 %v4318_v8, %v4323_v1  ;;  %v1079_v8 = vadd.f32 %v4320_v7, %v4334_v51 }
 0x1fc   :  { %v1265_v60 = vmax.f32 %v1221_v50, 0.0  ;;  %v3524_v50 = vld [vmem:[#allocation11 + $0x1d4] sm:$0xf] }
 0x1fe   :  { %v4344_v4 = vpack.c.bf16 %v1265_v60, %v1261_v56  ;;  %v4346_v39 = vpop.f32.mrf.mxu2  ;;  %v1122_v59 = vpop.f32.mrf.mxu3  ;;  %v3265_v56 = vor.u32 %v3524_v50, %v3262_v58  ;;  %v1077_v60 = vadd.f32 %v4312_v55, %v4334_v51  ;;  %v1182_v58 = vadd.f32 %v1181_v12, %v4323_v1 }
 0x1ff   :  { %v1123_v52 = vadd.f32 %v1122_v59, %v1074_v19  ;;  %v3474_v19 = vld [vmem:[#allocation11 + $0x44] sm:$0xf]  ;;  %v3126_v59 = vld [vmem:[#allocation11 + $0xc8] sm:$0xf0] }
 0x200   :  { %1899 = vmatmul.bf16.vlgmr.msra.gmra.mxu1 %v4344_v4  ;;  %v3065_v15 = vor.u32 %v3474_v19, %v3062_v17  ;;  %v3129_v55 = vor.u32 %v3490_v0, %v3126_v59  ;;  %v1082_v17 = vadd.f32 %v4331_v26, %v4334_v51  ;;  %v1084_v0 = vadd.f32 %v4346_v39, %v4334_v51 }
 0x201   :  { %v1264_v35 = vmax.f32 %v1123_v52, 0.0  ;;  %v1223_v62 = vpop.f32.mrf.mxu1  ;;  %v4362_v24 = vpop.f32.mrf.mxu0  ;;  %2089 = vmatpush.bf16.msrb.mxu1 %v3265_v56 }
 0x202   :  { %v1224_v43 = vadd.f32 %v1223_v62, %v1175_v10  ;;  %1943 = vmatpush.bf16.msra.mxu2 %v3065_v15  ;;  %1992 = vmatpush.bf16.msra.mxu3 %v3129_v55  ;;  %v3054_v15 = vld [vmem:[#allocation11 + $0x38] sm:$0xf0] }
 0x203   :  { %v4349_v41 = vpack.c.bf16 %v1264_v35, %v1260_v23  ;;  %1767 = vmatmul.bf16.gmra.mxu2 %v4239_v49  ;;  %1806 = vmatmul.bf16.gmra.mxu3 %v4181_v18  ;;  %v3118_v55 = vld [vmem:[#allocation11 + $0xb8] sm:$0xf0] }
 0x204   :  { %v1269_v34 = vmax.f32 %v1224_v43, 0.0 }
 0x205   :  { %1850 = vmatmul.bf16.vlgmr.msrb.gmra.mxu0 %v4349_v41 }
 0x206   :  { %v4356_v16 = vpop.f32.mrf.mxu2  ;;  %v1125_v48 = vpop.f32.mrf.mxu3 }
 0x207   :  { %v1126_v13 = vadd.f32 %v1125_v48, %v1077_v60  ;;  %v3506_v48 = vld [vmem:[#allocation11 + $0x144] sm:$0xf] }
 0x208   :  { %v3193_v50 = vor.u32 %v3506_v48, %v3190_v33  ;;  %v3522_v60 = vld [vmem:[#allocation11 + $0x1c4] sm:$0xf] }
 0x209   :  { %v1225_v2 = vpop.f32.mrf.mxu1  ;;  %v1268_v62 = vmax.f32 %v1126_v13, 0.0  ;;  %v1186_v10 = vpop.f32.mrf.mxu0 }
 0x20a   :  { %v1226_v63 = vadd.f32 %v1225_v2, %v1177_v57  ;;  %v1180_v57 = vadd.f32 %v4336_v42, %v4323_v1  ;;  %2041 = vmatpush.bf16.msra.mxu0 %v3193_v50  ;;  %v3472_v42 = vld [vmem:[#allocation11 + $0x34] sm:$0xf] }
 0x20b   :  { %v3057_v12 = vor.u32 %v3472_v42, %v3054_v15  ;;  %v3504_v50 = vld [vmem:[#allocation11 + $0x134] sm:$0xf] }
 0x20c   :  { %v1273_v20 = vmax.f32 %v1226_v63, 0.0 }
 0x20d   :  { %1944 = vmatpush.bf16.msra.mxu2 %v3057_v12  ;;  %v3520_v12 = vld [vmem:[#allocation11 + $0x1b4] sm:$0xf] }
 0x20e   :  { %v4366_v9 = vpop.f32.mrf.mxu2  ;;  %v1127_v52 = vpop.f32.mrf.mxu3  ;;  %v4368_v23 = vpack.c.bf16 %v1273_v20, %v1269_v34  ;;  %v3254_v34 = vld [vmem:[#allocation11 + $0x1c8] sm:$0xf0] }
 0x20f   :  { %v1128_v35 = vadd.f32 %v1127_v52, %v1079_v8  ;;  %v3257_v19 = vor.u32 %v3522_v60, %v3254_v34  ;;  %v3488_v52 = vld [vmem:[#allocation11 + $0xb4] sm:$0xf] }
 0x210   :  { %1904 = vmatmul.bf16.gmra.mxu1 %v4368_v23 }
 0x211   :  { %v1272_v40 = vmax.f32 %v1128_v35, 0.0  ;;  %v1228_v5 = vpop.f32.mrf.mxu1  ;;  %2090 = vmatpush.bf16.msrb.mxu1 %v3257_v19  ;;  %v4389_v48 = vpop.f32.mrf.mxu0  ;;  %v3046_v19 = vld [vmem:[#allocation11 + $0x28] sm:$0xf0] }
 0x212   :  { %v1229_v63 = vadd.f32 %v1228_v5, %v1180_v57  ;;  %v3121_v5 = vor.u32 %v3488_v52, %v3118_v55 }
 0x213   :  { %1772 = vmatmul.bf16.gmra.mxu2 %v4261_v45  ;;  %1811 = vmatmul.bf16.gmra.mxu3 %v4205_v46  ;;  %v4373_v7 = vpack.c.bf16 %v1272_v40, %v1268_v62 }
 0x214   :  { %v1277_v8 = vmax.f32 %v1229_v63, 0.0  ;;  %1993 = vmatpush.bf16.msra.mxu3 %v3121_v5  ;;  %v1185_v63 = vadd.f32 %v4362_v24, %v4323_v1  ;;  %v3246_v24 = vld [vmem:[#allocation11 + $0x1b8] sm:$0xf0] }
 0x215   :  { %1855 = vmatmul.bf16.gmra.mxu0 %v4373_v7  ;;  %v3249_v55 = vor.u32 %v3520_v12, %v3246_v24  ;;  %v3038_v5 = vld [vmem:[#allocation11 + $0x18] sm:$0xf0] }
 0x216   :  { %v4378_v43 = vpop.f32.mrf.mxu2  ;;  %v1130_v2 = vpop.f32.mrf.mxu3 }
 0x217   :  { %v1131_v59 = vadd.f32 %v1130_v2, %v1082_v17  ;;  %v996_v17 = vadd.f32 %v4199_v21, %v4133_v29  ;;  %2091 = vmatpush.bf16.msrb.mxu1 %v3249_v55  ;;  %v1190_v55 = vadd.f32 %v4389_v48, %v4323_v1  ;;  %v1092_v48 = vadd.f32 %v4378_v43, %v4334_v51 }
 0x219   :  { %v1230_v56 = vpop.f32.mrf.mxu1  ;;  %v1276_v33 = vmax.f32 %v1131_v59, 0.0  ;;  %v1045_v15 = vadd.f32 %v4249_v25, %v996_v17  ;;  %v1089_v25 = vadd.f32 %v4366_v9, %v4334_v51  ;;  %v3466_v17 = vld [vmem:[#allocation11 + $0x4] sm:$0xf] }
 0x21a   :  { %v1231_v20 = vadd.f32 %v1230_v56, %v1182_v58  ;;  %v3182_v58 = vld [vmem:[#allocation11 + $0x138] sm:$0xf0] }
 0x21b   :  { %v3185_v34 = vor.u32 %v3504_v50, %v3182_v58  ;;  %v1295_v50 = vmax.f32 %v1045_v15, 0.0 }
 0x21c   :  { %v1281_v13 = vmax.f32 %v1231_v20, 0.0  ;;  %v3470_v20 = vld [vmem:[#allocation11 + $0x24] sm:$0xf] }
 0x21d   :  { %2042 = vmatpush.bf16.msra.mxu0 %v3185_v34 }
 0x21e   :  { %v4385_v35 = vpop.f32.mrf.mxu2  ;;  %v1132_v62 = vpop.f32.mrf.mxu3  ;;  %v4387_v40 = vpack.c.bf16 %v1281_v13, %v1277_v8  ;;  %v3049_v8 = vor.u32 %v3470_v20, %v3046_v19  ;;  %v1187_v13 = vadd.f32 %v1186_v10, %v4323_v1  ;;  %v3486_v10 = vld [vmem:[#allocation11 + $0xa4] sm:$0xf] }
 0x21f   :  { %v1133_v26 = vadd.f32 %v1132_v62, %v1084_v0  ;;  %v1191_v0 = vpop.f32.mrf.mxu0  ;;  %v3468_v62 = vld [vmem:[#allocation11 + $0x14] sm:$0xf] }
 0x220   :  { %1909 = vmatmul.bf16.gmra.mxu1 %v4387_v40  ;;  %1945 = vmatpush.bf16.msra.mxu2 %v3049_v8  ;;  %v3041_v21 = vor.u32 %v3468_v62, %v3038_v5  ;;  %v1291_v8 = vmax.f32 %v4235_v47, 0.0  ;;  %v3502_v47 = vld [vmem:[#allocation11 + $0x124] sm:$0xf] }
 0x221   :  { %v1280_v57 = vmax.f32 %v1133_v26, 0.0  ;;  %v1233_v39 = vpop.f32.mrf.mxu1  ;;  %v1087_v26 = vadd.f32 %v4356_v16, %v4334_v51  ;;  %v3030_v16 = vld [vmem:[#allocation11 + $0x8] sm:$0xf0] }
 0x222   :  { %v1234_v42 = vadd.f32 %v1233_v39, %v1185_v63  ;;  %v3110_v39 = vld [vmem:[#allocation11 + $0xa8] sm:$0xf0] }
 0x223   :  { %1777 = vmatmul.bf16.gmra.mxu2 %v4285_v28  ;;  %1816 = vmatmul.bf16.gmra.mxu3 %v4229_v31  ;;  %v4394_v2 = vpack.c.bf16 %v1280_v57, %v1276_v33  ;;  %v3113_v63 = vor.u32 %v3486_v10, %v3110_v39 }
 0x224   :  { %v1285_v33 = vmax.f32 %v1234_v42, 0.0  ;;  %1946 = vmatpush.bf16.msra.mxu2 %v3041_v21  ;;  %v3033_v42 = vor.u32 %v3466_v17, %v3030_v16  ;;  %v1001_v21 = vadd.f32 %v4223_v36, %v4133_v29  ;;  %v3484_v16 = vld [vmem:[#allocation11 + $0x94] sm:$0xf] }
 0x225   :  { %1860 = vmatmul.bf16.gmra.mxu0 %v4394_v2  ;;  %1994 = vmatpush.bf16.msra.mxu3 %v3113_v63 }
 0x226   :  { %v4399_v56 = vpop.f32.mrf.mxu2  ;;  %v1135_v60 = vpop.f32.mrf.mxu3  ;;  %v1050_v10 = vadd.f32 %v4271_v30, %v1001_v21 }
 0x227   :  { %v1136_v58 = vadd.f32 %v1135_v60, %v1087_v26  ;;  %v4415_v60 = vpack.c.bf16 %v1295_v50, %v1291_v8  ;;  %v1194_v12 = vpop.f32.mrf.mxu0  ;;  %v3518_v50 = vld [vmem:[#allocation11 + $0x1a4] sm:$0xf]  ;;  %v3102_v8 = vld [vmem:[#allocation11 + $0x98] sm:$0xf0] }
 0x228   :  { %1947 = vmatpush.bf16.msra.mxu2 %v3033_v42  ;;  %v1303_v36 = vmax.f32 %v1050_v10, 0.0  ;;  %v3105_v30 = vor.u32 %v3484_v16, %v3102_v8  ;;  %v3230_v16 = vld [vmem:[#allocation11 + $0x198] sm:$0xf0] }
 0x229   :  { %v1235_v59 = vpop.f32.mrf.mxu1  ;;  %v1284_v15 = vmax.f32 %v1136_v58, 0.0 }
 0x22a   :  { %v1236_v52 = vadd.f32 %v1235_v59, %v1187_v13  ;;  %1995 = vmatpush.bf16.msra.mxu3 %v3105_v30  ;;  %v3482_v30 = vld [vmem:[#allocation11 + $0x84] sm:$0xf] }
 0x22c   :  { %v1289_v57 = vmax.f32 %v1236_v52, 0.0  ;;  %v3174_v52 = vld [vmem:[#allocation11 + $0x128] sm:$0xf0] }
 0x22d   :  { %v3177_v26 = vor.u32 %v3502_v47, %v3174_v52  ;;  %v1299_v47 = vmax.f32 %v4257_v14, 0.0  ;;  %v1195_v14 = vadd.f32 %v1194_v12, %v4323_v1  ;;  %v1097_v12 = vadd.f32 %v4399_v56, %v4334_v51 }
 0x22e   :  { %v4409_v34 = vpop.f32.mrf.mxu2  ;;  %v1137_v20 = vpop.f32.mrf.mxu3  ;;  %v4411_v19 = vpack.c.bf16 %v1289_v57, %v1285_v33  ;;  %v1192_v33 = vadd.f32 %v1191_v0, %v4323_v1  ;;  %v1094_v0 = vadd.f32 %v4385_v35, %v4334_v51 }
 0x22f   :  { %v1138_v13 = vadd.f32 %v1137_v20, %v1089_v25  ;;  %2043 = vmatpush.bf16.msra.mxu0 %v3177_v26  ;;  %v3238_v25 = vld [vmem:[#allocation11 + $0x1a8] sm:$0xf0]  ;;  %v4440_v21 = vpack.c.bf16 %v1303_v36, %v1299_v47 }
 0x230   :  { %1914 = vmatmul.bf16.gmra.mxu1 %v4411_v19  ;;  %v3241_v63 = vor.u32 %v3518_v50, %v3238_v25  ;;  %v1006_v50 = vadd.f32 %v4247_v22, %v4133_v29  ;;  %v3094_v22 = vld [vmem:[#allocation11 + $0x88] sm:$0xf0] }
 0x231   :  { %v1288_v59 = vmax.f32 %v1138_v13, 0.0  ;;  %v1238_v9 = vpop.f32.mrf.mxu1  ;;  %v1196_v13 = vpop.f32.mrf.mxu0 }
 0x232   :  { %v1239_v57 = vadd.f32 %v1238_v9, %v1190_v55  ;;  %2092 = vmatpush.bf16.msrb.mxu1 %v3241_v63 }
 0x233   :  { %1782 = vmatmul.bf16.gmra.mxu2 %v4307_v32  ;;  %1821 = vmatmul.bf16.gmra.mxu3 %v4415_v60  ;;  %v4419_v24 = vpack.c.bf16 %v1288_v59, %v1284_v15 }
 0x234   :  { %v1293_v20 = vmax.f32 %v1239_v57, 0.0 }
 0x235   :  { %1865 = vmatmul.bf16.gmra.mxu0 %v4419_v24 }
 0x236   :  { %v4424_v62 = vpop.f32.mrf.mxu2  ;;  %v1140_v5 = vpop.f32.mrf.mxu3 }
 0x237   :  { %v1141_v42 = vadd.f32 %v1140_v5, %v1092_v48  ;;  %v3500_v5 = vld [vmem:[#allocation11 + $0x114] sm:$0xf]  ;;  %v1055_v48 = vadd.f32 %v4292_v3, %v1006_v50 }
 0x239   :  { %v1240_v39 = vpop.f32.mrf.mxu1  ;;  %v1292_v52 = vmax.f32 %v1141_v42, 0.0  ;;  %v1199_v25 = vpop.f32.mrf.mxu0 }
 0x23a   :  { %v1241_v58 = vadd.f32 %v1240_v39, %v1192_v33  ;;  %v3166_v33 = vld [vmem:[#allocation11 + $0x118] sm:$0xf0] }
 0x23b   :  { %v3169_v39 = vor.u32 %v3500_v5, %v3166_v33 }
 0x23c   :  { %v1297_v17 = vmax.f32 %v1241_v58, 0.0  ;;  %v1197_v58 = vadd.f32 %v1196_v13, %v4323_v1  ;;  %v1099_v13 = vadd.f32 %v4409_v34, %v4334_v51 }
 0x23d   :  { %2044 = vmatpush.bf16.msra.mxu0 %v3169_v39 }
 0x23e   :  { %v4434_v15 = vpop.f32.mrf.mxu2  ;;  %v1142_v59 = vpop.f32.mrf.mxu3  ;;  %v4436_v9 = vpack.c.bf16 %v1297_v17, %v1293_v20  ;;  %v3516_v17 = vld [vmem:[#allocation11 + $0x194] sm:$0xf] }
 0x23f   :  { %v1143_v43 = vadd.f32 %v1142_v59, %v1094_v0  ;;  %v3233_v36 = vor.u32 %v3516_v17, %v3230_v16  ;;  %v1311_v59 = vmax.f32 %v1055_v48, 0.0  ;;  %v1011_v17 = vadd.f32 %v4269_v37, %v4133_v29  ;;  %v3514_v16 = vld [vmem:[#allocation11 + $0x184] sm:$0xf] }
 0x240   :  { %1919 = vmatmul.bf16.gmra.mxu1 %v4436_v9  ;;  %v1104_v29 = vadd.f32 %v4434_v15, %v4334_v51 }
 0x241   :  { %v1296_v55 = vmax.f32 %v1143_v43, 0.0  ;;  %v1243_v26 = vpop.f32.mrf.mxu1  ;;  %2093 = vmatpush.bf16.msrb.mxu1 %v3233_v36  ;;  %v3097_v43 = vor.u32 %v3482_v30, %v3094_v22  ;;  %v1201_v56 = vpop.f32.mrf.mxu0 }
 0x242   :  { %v1244_v63 = vadd.f32 %v1243_v26, %v1195_v14  ;;  %v1307_v26 = vmax.f32 %v4281_v54, 0.0  ;;  %v3158_v54 = vld [vmem:[#allocation11 + $0x108] sm:$0xf0]  ;;  %v1202_v36 = vadd.f32 %v1201_v56, %v4323_v1 }
 0x243   :  { %1787 = vmatmul.bf16.gmra.mxu2 %v4327_v38  ;;  %1826 = vmatmul.bf16.gmra.mxu3 %v4440_v21  ;;  %v4444_v35 = vpack.c.bf16 %v1296_v55, %v1292_v52 }
 0x244   :  { %v1301_v0 = vmax.f32 %v1244_v63, 0.0  ;;  %1996 = vmatpush.bf16.msra.mxu3 %v3097_v43  ;;  %v4464_v50 = vpack.c.bf16 %v1311_v59, %v1307_v26 }
 0x245   :  { %1870 = vmatmul.bf16.gmra.mxu0 %v4444_v35 }
 0x246   :  { %v4448_v57 = vpop.f32.mrf.mxu2  ;;  %v1145_v10 = vpop.f32.mrf.mxu3 }
 0x247   :  { %v1146_v47 = vadd.f32 %v1145_v10, %v1097_v12  ;;  %v3498_v10 = vld [vmem:[#allocation11 + $0x104] sm:$0xf] }
 0x249   :  { %v1245_v20 = vpop.f32.mrf.mxu1  ;;  %v1300_v33 = vmax.f32 %v1146_v47, 0.0  ;;  %v1204_v22 = vpop.f32.mrf.mxu0 }
 0x24a   :  { %v1246_v8 = vadd.f32 %v1245_v20, %v1197_v58  ;;  %v1200_v58 = vadd.f32 %v1199_v25, %v4323_v1  ;;  %v3161_v20 = vor.u32 %v3498_v10, %v3158_v54  ;;  %v1102_v25 = vadd.f32 %v4424_v62, %v4334_v51 }
 0x24b   :  { %v1205_v10 = vadd.f32 %v1204_v22, %v4323_v1 }
 0x24c   :  { %v1305_v42 = vmax.f32 %v1246_v8, 0.0  ;;  %v3222_v8 = vld [vmem:[#allocation11 + $0x188] sm:$0xf0]  ;;  %2045 = vmatpush.bf16.msra.mxu0 %v3161_v20 }
 0x24e   :  { %v4458_v3 = vpop.f32.mrf.mxu2  ;;  %v1147_v52 = vpop.f32.mrf.mxu3  ;;  %v4460_v55 = vpack.c.bf16 %v1305_v42, %v1301_v0  ;;  %v1060_v0 = vadd.f32 %v4314_v61, %v1011_v17  ;;  %v1315_v61 = vmax.f32 %v4301_v44, 0.0 }
 0x24f   :  { %v1148_v5 = vadd.f32 %v1147_v52, %v1099_v13 }
 0x250   :  { %1924 = vmatmul.bf16.gmra.mxu1 %v4460_v55  ;;  %v1319_v47 = vmax.f32 %v1060_v0, 0.0 }
 0x251   :  { %v1304_v14 = vmax.f32 %v1148_v5, 0.0  ;;  %v1248_v39 = vpop.f32.mrf.mxu1 }
 0x252   :  { %v1249_v12 = vadd.f32 %v1248_v39, %v1200_v58  ;;  %v1206_v39 = vpop.f32.mrf.mxu0 }
 0x253   :  { %1831 = vmatmul.bf16.gmra.mxu3 %v4464_v50  ;;  %1948 = vmatmul.bf16.vlgmr.msra.gmra.mxu2 %v4163_v27  ;;  %v4468_v34 = vpack.c.bf16 %v1304_v14, %v1300_v33  ;;  %v3225_v27 = vor.u32 %v3514_v16, %v3222_v8  ;;  %v4484_v14 = vpack.c.bf16 %v1319_v47, %v1315_v61 }
 0x254   :  { %v1309_v59 = vmax.f32 %v1249_v12, 0.0  ;;  %v1207_v58 = vadd.f32 %v1206_v39, %v4323_v1  ;;  %v1107_v16 = vadd.f32 %v4448_v57, %v4334_v51 }
 0x255   :  { %1875 = vmatmul.bf16.gmra.mxu0 %v4468_v34  ;;  %2094 = vmatpush.bf16.msrb.mxu1 %v3225_v27  ;;  %v4500_v27 = vld [vmem:[%s4666_s6] sm:$0x3] }
 0x256   :  { %v1150_v63 = vpop.f32.mrf.mxu3  ;;  %v1753_v48 = vpop.f32.mrf.mxu2  ;;  %v4506_v57 = vperm.slane %v4500_v27, 0 }
 0x257   :  { %v1151_v37 = vadd.f32 %v1150_v63, %v1102_v25 }
 0x259   :  { %v1250_v42 = vpop.f32.mrf.mxu1  ;;  %v1308_v56 = vmax.f32 %v1151_v37, 0.0  ;;  %v3545_v37 = vld [vmem:[#allocation13 + $0x78] sm:$0xff] }
 0x25a   :  { %v1251_v30 = vadd.f32 %v1250_v42, %v1202_v36  ;;  %2365 = vmatpush.bf16.msrb.mxu3 %v3545_v37 }
 0x25c   :  { %v1313_v13 = vmax.f32 %v1251_v30, 0.0 }
 0x25e   :  { %v1152_v43 = vpop.f32.mrf.mxu3  ;;  %v1755_v52 = vpop.f32.mrf.mxu2  ;;  %v4480_v26 = vpack.c.bf16 %v1313_v13, %v1309_v59  ;;  %v3537_v59 = vld [vmem:[#allocation13 + $0x38] sm:$0xff] }
 0x25f   :  { %v1153_v5 = vadd.f32 %v1152_v43, %v1104_v29  ;;  %2316 = vmatpush.bf16.msrb.mxu2 %v3537_v59  ;;  %v1756_v43 = vadd.f32 %v1755_v52, %v4506_v57 }
 0x260   :  { %1929 = vmatmul.bf16.gmra.mxu1 %v4480_v26 }
 0x261   :  { %v1312_v33 = vmax.f32 %v1153_v5, 0.0  ;;  %v1253_v62 = vpop.f32.mrf.mxu1 }
 0x262   :  { %v1254_v63 = vadd.f32 %v1253_v62, %v1205_v10 }
 0x263   :  { %1836 = vmatmul.bf16.gmra.mxu3 %v4484_v14  ;;  %1953 = vmatmul.bf16.gmra.mxu2 %v4189_v6  ;;  %v4488_v15 = vpack.c.bf16 %v1312_v33, %v1308_v56  ;;  %v1109_v6 = vadd.f32 %v4458_v3, %v4334_v51  ;;  %v1754_v3 = vadd.f32 %v1753_v48, %v4506_v57 }
 0x264   :  { %v1317_v8 = vmax.f32 %v1254_v63, 0.0  ;;  %v3544_v63 = vld [vmem:[#allocation13 + $0x70] sm:$0xff] }
 0x265   :  { %1880 = vmatmul.bf16.gmra.mxu0 %v4488_v15  ;;  %2366 = vmatpush.bf16.msrb.mxu3 %v3544_v63 }
 0x266   :  { %v1155_v44 = vpop.f32.mrf.mxu3  ;;  %v1758_v54 = vpop.f32.mrf.mxu2 }
 0x267   :  { %v1156_v12 = vadd.f32 %v1155_v44, %v1107_v16  ;;  %v1759_v48 = vadd.f32 %v1758_v54, %v4506_v57 }
 0x269   :  { %v1255_v20 = vpop.f32.mrf.mxu1  ;;  %v1316_v25 = vmax.f32 %v1156_v12, 0.0  ;;  %v3535_v12 = vld [vmem:[#allocation13 + $0x28] sm:$0xff] }
 0x26a   :  { %v1256_v17 = vadd.f32 %v1255_v20, %v1207_v58 }
 0x26c   :  { %v1321_v36 = vmax.f32 %v1256_v17, 0.0 }
 0x26e   :  { %v1157_v0 = vpop.f32.mrf.mxu3  ;;  %v1760_v42 = vpop.f32.mrf.mxu2  ;;  %v4502_v1 = vpack.c.bf16 %v1321_v36, %v1317_v8 }
 0x26f   :  { %v1158_v30 = vadd.f32 %v1157_v0, %v1109_v6  ;;  %v1761_v17 = vadd.f32 %v1760_v42, %v4506_v57 }
 0x270   :  { %1934 = vmatmul.bf16.gmra.mxu1 %v4502_v1 }
 0x271   :  { %v1320_v22 = vmax.f32 %v1158_v30, 0.0 }
 0x273   :  { %1958 = vmatmul.bf16.gmra.mxu2 %v4213_v53  ;;  %1997 = vmatmul.bf16.vlgmr.msra.gmra.mxu3 %v4155_v11  ;;  %v4510_v51 = vpack.c.bf16 %v1320_v22, %v1316_v25  ;;  %v3536_v11 = vld [vmem:[#allocation13 + $0x30] sm:$0xff] }
 0x274   :  { %2317 = vmatpush.bf16.msrb.mxu2 %v3536_v11 }
 0x275   :  { %1885 = vmatmul.bf16.gmra.mxu0 %v4510_v51 }
 0x276   :  { %v1763_v13 = vpop.f32.mrf.mxu2  ;;  %v1802_v47 = vpop.f32.mrf.mxu3 }
 0x277   :  { %v1803_v29 = vadd.f32 %v1802_v47, %v1754_v3  ;;  %v1764_v42 = vadd.f32 %v1763_v13, %v4506_v57 }
 0x278   :  { %2318 = vmatpush.bf16.msrb.mxu2 %v3535_v12  ;;  %v3530_v12 = vld [vmem:[#allocation13] sm:$0xff] }
 0x27d   :  { %v1900_v61 = vpop.f32.mrf.mxu1 }
 0x27e   :  { %v1765_v5 = vpop.f32.mrf.mxu2  ;;  %v1804_v56 = vpop.f32.mrf.mxu3 }
 0x27f   :  { %v1805_v53 = vadd.f32 %v1804_v56, %v1756_v43  ;;  %v1766_v43 = vadd.f32 %v1765_v5, %v4506_v57  ;;  %v3533_v5 = vld [vmem:[#allocation13 + $0x18] sm:$0xff] }
 0x280   :  { %2095 = vmatmul.bf16.vlgmr.msrb.gmra.mxu1 %v4344_v4 }
 0x282   :  { %v1851_v33 = vpop.f32.mrf.mxu0 }
 0x283   :  { %v1852_v62 = vadd.f32 %v1851_v33, %v1803_v29  ;;  %1963 = vmatmul.bf16.gmra.mxu2 %v4239_v49  ;;  %2002 = vmatmul.bf16.gmra.mxu3 %v4181_v18  ;;  %v3534_v33 = vld [vmem:[#allocation13 + $0x20] sm:$0xff] }
 0x284   :  { %2319 = vmatpush.bf16.msrb.mxu2 %v3534_v33 }
 0x285   :  { %v1901_v39 = vadd.f32 %v1900_v61, %v1852_v62  ;;  %v1902_v10 = vpop.f32.mrf.mxu1  ;;  %2046 = vmatmul.bf16.vlgmr.msra.gmra.mxu0 %v4349_v41 }
 0x286   :  { %v1768_v52 = vpop.f32.mrf.mxu2  ;;  %v1807_v44 = vpop.f32.mrf.mxu3 }
 0x287   :  { %v1808_v58 = vadd.f32 %v1807_v44, %v1759_v48  ;;  %v2136_v18 = vmax.f32 %v1901_v39, 0.0  ;;  %v1769_v39 = vadd.f32 %v1768_v52, %v4506_v57 }
 0x288   :  { %2320 = vmatpush.bf16.msrb.mxu2 %v3533_v5 }
 0x28a   :  { %v1853_v4 = vpop.f32.mrf.mxu0 }
 0x28b   :  { %v1854_v20 = vadd.f32 %v1853_v4, %v1805_v53  ;;  %v3542_v4 = vld [vmem:[#allocation13 + $0x60] sm:$0xff] }
 0x28d   :  { %v1903_v16 = vadd.f32 %v1902_v10, %v1854_v20  ;;  %v1905_v8 = vpop.f32.mrf.mxu1  ;;  %v3532_v20 = vld [vmem:[#allocation13 + $0x10] sm:$0xff] }
 0x28e   :  { %v1770_v49 = vpop.f32.mrf.mxu2  ;;  %v1809_v36 = vpop.f32.mrf.mxu3  ;;  %2321 = vmatpush.bf16.msrb.mxu2 %v3532_v20 }
 0x28f   :  { %v2138_v6 = vmax.f32 %v1903_v16, 0.0  ;;  %v1810_v54 = vadd.f32 %v1809_v36, %v1761_v17 }
 0x290   :  { %2100 = vmatmul.bf16.gmra.mxu1 %v4368_v23  ;;  %v3543_v23 = vld [vmem:[#allocation13 + $0x68] sm:$0xff] }
 0x291   :  { %v4522_v41 = vpack.c.bf16 %v2138_v6, %v2136_v18  ;;  %2367 = vmatpush.bf16.msrb.mxu3 %v3543_v23 }
 0x292   :  { %v1856_v0 = vpop.f32.mrf.mxu0 }
 0x293   :  { %v1857_v30 = vadd.f32 %v1856_v0, %v1808_v58  ;;  %1968 = vmatmul.bf16.gmra.mxu2 %v4261_v45  ;;  %2007 = vmatmul.bf16.gmra.mxu3 %v4205_v46 }
 0x295   :  { %v1906_v25 = vadd.f32 %v1905_v8, %v1857_v30  ;;  %v1907_v22 = vpop.f32.mrf.mxu1  ;;  %2051 = vmatmul.bf16.gmra.mxu0 %v4373_v7  ;;  %2368 = vmatpush.bf16.msrb.mxu3 %v3542_v4 }
 0x296   :  { %v1773_v59 = vpop.f32.mrf.mxu2  ;;  %v1812_v3 = vpop.f32.mrf.mxu3 }
 0x297   :  { %v1813_v47 = vadd.f32 %v1812_v3, %v1764_v42  ;;  %v2140_v53 = vmax.f32 %v1906_v25, 0.0 }
 0x29a   :  { %v1858_v29 = vpop.f32.mrf.mxu0 }
 0x29b   :  { %v1859_v37 = vadd.f32 %v1858_v29, %v1810_v54  ;;  %v3541_v29 = vld [vmem:[#allocation13 + $0x58] sm:$0xff] }
 0x29c   :  { %2369 = vmatpush.bf16.msrb.mxu3 %v3541_v29 }
 0x29d   :  { %v1908_v61 = vadd.f32 %v1907_v22, %v1859_v37  ;;  %v1910_v56 = vpop.f32.mrf.mxu1 }
 0x29e   :  { %v4529_v45 = vpop.f32.mrf.mxu2  ;;  %v1814_v46 = vpop.f32.mrf.mxu3 }
 0x29f   :  { %v2142_v13 = vmax.f32 %v1908_v61, 0.0  ;;  %v1815_v11 = vadd.f32 %v1814_v46, %v1766_v43  ;;  %v1776_v5 = vadd.f32 %v4529_v45, %v4506_v57 }
 0x2a0   :  { %2105 = vmatmul.bf16.gmra.mxu1 %v4387_v40 }
 0x2a1   :  { %v4532_v7 = vpack.c.bf16 %v2142_v13, %v2140_v53 }
 0x2a2   :  { %v1861_v62 = vpop.f32.mrf.mxu0 }
 0x2a3   :  { %v1862_v48 = vadd.f32 %v1861_v62, %v1813_v47  ;;  %1973 = vmatmul.bf16.gmra.mxu2 %v4285_v28  ;;  %2012 = vmatmul.bf16.gmra.mxu3 %v4229_v31  ;;  %v3531_v28 = vld [vmem:[#allocation13 + $0x8] sm:$0xff]  ;;  %v1771_v31 = vadd.f32 %v1770_v49, %v4506_v57  ;;  %v1774_v49 = vadd.f32 %v1773_v59, %v4506_v57 }
 0x2a4   :  { %2322 = vmatpush.bf16.msrb.mxu2 %v3531_v28 }
 0x2a5   :  { %v1911_v10 = vadd.f32 %v1910_v56, %v1862_v48  ;;  %v1912_v44 = vpop.f32.mrf.mxu1  ;;  %2056 = vmatmul.bf16.gmra.mxu0 %v4394_v2 }
 0x2a6   :  { %v1778_v58 = vpop.f32.mrf.mxu2  ;;  %v1817_v63 = vpop.f32.mrf.mxu3 }
 0x2a7   :  { %v1818_v40 = vadd.f32 %v1817_v63, %v1769_v39  ;;  %v2144_v2 = vmax.f32 %v1911_v10, 0.0  ;;  %v1779_v13 = vadd.f32 %v1778_v58, %v4506_v57  ;;  %v3540_v39 = vld [vmem:[#allocation13 + $0x50] sm:$0xff] }
 0x2a8   :  { %2323 = vmatpush.bf16.msrb.mxu2 %v3530_v12  ;;  %2370 = vmatpush.bf16.msrb.mxu3 %v3540_v39 }
 0x2aa   :  { %v1863_v17 = vpop.f32.mrf.mxu0 }
 0x2ab   :  { %v1864_v16 = vadd.f32 %v1863_v17, %v1815_v11 }
 0x2ad   :  { %v1913_v8 = vadd.f32 %v1912_v44, %v1864_v16  ;;  %v1915_v36 = vpop.f32.mrf.mxu1 }
 0x2ae   :  { %v4539_v52 = vpop.f32.mrf.mxu2  ;;  %v1819_v18 = vpop.f32.mrf.mxu3 }
 0x2af   :  { %v2146_v6 = vmax.f32 %v1913_v8, 0.0  ;;  %v1820_v54 = vadd.f32 %v1819_v18, %v1771_v31  ;;  %v1781_v18 = vadd.f32 %v4539_v52, %v4506_v57 }
 0x2b0   :  { %2110 = vmatmul.bf16.gmra.mxu1 %v4411_v19 }
 0x2b1   :  { %v4542_v0 = vpack.c.bf16 %v2146_v6, %v2144_v2  ;;  %v3539_v2 = vld [vmem:[#allocation13 + $0x48] sm:$0xff] }
 0x2b2   :  { %v1866_v30 = vpop.f32.mrf.mxu0  ;;  %2371 = vmatpush.bf16.msrb.mxu3 %v3539_v2 }
 0x2b3   :  { %v1867_v42 = vadd.f32 %v1866_v30, %v1818_v40  ;;  %1978 = vmatmul.bf16.gmra.mxu2 %v4307_v32  ;;  %2017 = vmatmul.bf16.gmra.mxu3 %v4415_v60 }
 0x2b5   :  { %v1916_v25 = vadd.f32 %v1915_v36, %v1867_v42  ;;  %v1917_v22 = vpop.f32.mrf.mxu1  ;;  %2061 = vmatmul.bf16.gmra.mxu0 %v4419_v24 }
 0x2b6   :  { %v1783_v3 = vpop.f32.mrf.mxu2  ;;  %v1822_v47 = vpop.f32.mrf.mxu3 }
 0x2b7   :  { %v1823_v23 = vadd.f32 %v1822_v47, %v1774_v49  ;;  %v2148_v46 = vmax.f32 %v1916_v25, 0.0  ;;  %v1784_v45 = vadd.f32 %v1783_v3, %v4506_v57 }
 0x2ba   :  { %v1868_v19 = vpop.f32.mrf.mxu0 }
 0x2bb   :  { %v1869_v37 = vadd.f32 %v1868_v19, %v1820_v54 }
 0x2bd   :  { %v1918_v43 = vadd.f32 %v1917_v22, %v1869_v37  ;;  %v1920_v61 = vpop.f32.mrf.mxu1 }
 0x2be   :  { %v4548_v56 = vpop.f32.mrf.mxu2  ;;  %v1824_v32 = vpop.f32.mrf.mxu3 }
 0x2bf   :  { %v2150_v60 = vmax.f32 %v1918_v43, 0.0  ;;  %v1825_v10 = vadd.f32 %v1824_v32, %v1776_v5  ;;  %v1786_v19 = vadd.f32 %v4548_v56, %v4506_v57 }
 0x2c0   :  { %2115 = vmatmul.bf16.gmra.mxu1 %v4436_v9 }
 0x2c1   :  { %v4551_v59 = vpack.c.bf16 %v2150_v60, %v2148_v46 }
 0x2c2   :  { %v1871_v53 = vpop.f32.mrf.mxu0 }
 0x2c3   :  { %v1872_v24 = vadd.f32 %v1871_v53, %v1823_v23  ;;  %1983 = vmatmul.bf16.gmra.mxu2 %v4327_v38  ;;  %2022 = vmatmul.bf16.gmra.mxu3 %v4440_v21 }
 0x2c5   :  { %v1921_v11 = vadd.f32 %v1920_v61, %v1872_v24  ;;  %v1922_v33 = vpop.f32.mrf.mxu1  ;;  %2066 = vmatmul.bf16.gmra.mxu0 %v4444_v35 }
 0x2c6   :  { %v1788_v62 = vpop.f32.mrf.mxu2  ;;  %v1827_v48 = vpop.f32.mrf.mxu3 }
 0x2c7   :  { %v1828_v9 = vadd.f32 %v1827_v48, %v1779_v13  ;;  %v2152_v4 = vmax.f32 %v1921_v11, 0.0  ;;  %v1789_v52 = vadd.f32 %v1788_v62, %v4506_v57 }
 0x2ca   :  { %v1873_v44 = vpop.f32.mrf.mxu0 }
 0x2cb   :  { %v1874_v63 = vadd.f32 %v1873_v44, %v1825_v10 }
 0x2cd   :  { %v1923_v38 = vadd.f32 %v1922_v33, %v1874_v63  ;;  %v1925_v40 = vpop.f32.mrf.mxu1 }
 0x2ce   :  { %v4559_v21 = vpop.f32.mrf.mxu2  ;;  %v1829_v58 = vpop.f32.mrf.mxu3 }
 0x2cf   :  { %v2154_v20 = vmax.f32 %v1923_v38, 0.0  ;;  %v1830_v6 = vadd.f32 %v1829_v58, %v1781_v18  ;;  %v1791_v5 = vadd.f32 %v4559_v21, %v4506_v57 }
 0x2d0   :  { %2120 = vmatmul.bf16.gmra.mxu1 %v4460_v55 }
 0x2d1   :  { %v4562_v35 = vpack.c.bf16 %v2154_v20, %v2152_v4 }
 0x2d2   :  { %v1876_v17 = vpop.f32.mrf.mxu0 }
 0x2d3   :  { %v1877_v16 = vadd.f32 %v1876_v17, %v1828_v9  ;;  %2027 = vmatmul.bf16.gmra.mxu3 %v4464_v50  ;;  %2324 = vmatmul.bf16.vlgmr.msrb.gmra.mxu2 %v4522_v41 }
 0x2d5   :  { %v1926_v28 = vadd.f32 %v1925_v40, %v1877_v16  ;;  %v1927_v31 = vpop.f32.mrf.mxu1  ;;  %2071 = vmatmul.bf16.gmra.mxu0 %v4468_v34  ;;  %v4587_v40 = vperm.slane %v4500_v27, 1 }
 0x2d6   :  { %v1832_v8 = vpop.f32.mrf.mxu3  ;;  %v1949_v36 = vpop.f32.mrf.mxu2 }
 0x2d7   :  { %v1833_v55 = vadd.f32 %v1832_v8, %v1784_v45  ;;  %v2156_v49 = vmax.f32 %v1926_v28, 0.0 }
 0x2da   :  { %v1878_v54 = vpop.f32.mrf.mxu0 }
 0x2db   :  { %v1879_v12 = vadd.f32 %v1878_v54, %v1830_v6 }
 0x2dd   :  { %v1928_v50 = vadd.f32 %v1927_v31, %v1879_v12  ;;  %v1930_v30 = vpop.f32.mrf.mxu1  ;;  %v3553_v31 = vld [vmem:[#allocation14 + $0x38] sm:$0xff] }
 0x2de   :  { %v1834_v41 = vpop.f32.mrf.mxu3  ;;  %v1951_v42 = vpop.f32.mrf.mxu2  ;;  %2506 = vmatpush.bf16.msrb.mxu0 %v3553_v31 }
 0x2df   :  { %v2158_v25 = vmax.f32 %v1928_v50, 0.0  ;;  %v1835_v61 = vadd.f32 %v1834_v41, %v1786_v19  ;;  %v1952_v45 = vadd.f32 %v1951_v42, %v4587_v40 }
 0x2e0   :  { %2125 = vmatmul.bf16.gmra.mxu1 %v4480_v26  ;;  %v3538_v26 = vld [vmem:[#allocation13 + $0x40] sm:$0xff] }
 0x2e1   :  { %v4571_v34 = vpack.c.bf16 %v2158_v25, %v2156_v49  ;;  %2372 = vmatpush.bf16.msrb.mxu3 %v3538_v26 }
 0x2e2   :  { %v1881_v22 = vpop.f32.mrf.mxu0 }
 0x2e3   :  { %v1882_v3 = vadd.f32 %v1881_v22, %v1833_v55  ;;  %2032 = vmatmul.bf16.gmra.mxu3 %v4484_v14  ;;  %2329 = vmatmul.bf16.gmra.mxu2 %v4532_v7 }
 0x2e5   :  { %v1931_v47 = vadd.f32 %v1930_v30, %v1882_v3  ;;  %v1932_v23 = vpop.f32.mrf.mxu1  ;;  %2076 = vmatmul.bf16.gmra.mxu0 %v4488_v15 }
 0x2e6   :  { %v1837_v29 = vpop.f32.mrf.mxu3  ;;  %v1954_v43 = vpop.f32.mrf.mxu2 }
 0x2e7   :  { %v1838_v37 = vadd.f32 %v1837_v29, %v1789_v52  ;;  %v2160_v53 = vmax.f32 %v1931_v47, 0.0  ;;  %v1955_v41 = vadd.f32 %v1954_v43, %v4587_v40  ;;  %v3552_v52 = vld [vmem:[#allocation14 + $0x30] sm:$0xff] }
 0x2e8   :  { %2507 = vmatpush.bf16.msrb.mxu0 %v3552_v52 }
 0x2ea   :  { %v1883_v32 = vpop.f32.mrf.mxu0 }
 0x2eb   :  { %v1884_v46 = vadd.f32 %v1883_v32, %v1835_v61 }
 0x2ed   :  { %v1933_v14 = vadd.f32 %v1932_v23, %v1884_v46  ;;  %v1935_v60 = vpop.f32.mrf.mxu1 }
 0x2ee   :  { %v1839_v7 = vpop.f32.mrf.mxu3  ;;  %v1956_v15 = vpop.f32.mrf.mxu2 }
 0x2ef   :  { %v2162_v24 = vmax.f32 %v1933_v14, 0.0  ;;  %v1840_v9 = vadd.f32 %v1839_v7, %v1791_v5  ;;  %v1957_v22 = vadd.f32 %v1956_v15, %v4587_v40 }
 0x2f0   :  { %2130 = vmatmul.bf16.gmra.mxu1 %v4502_v1 }
 0x2f1   :  { %v4580_v13 = vpack.c.bf16 %v2162_v24, %v2160_v53 }
 0x2f2   :  { %v1886_v11 = vpop.f32.mrf.mxu0 }
 0x2f3   :  { %v1887_v33 = vadd.f32 %v1886_v11, %v1838_v37  ;;  %2334 = vmatmul.bf16.gmra.mxu2 %v4542_v0 }
 0x2f5   :  { %v1936_v56 = vadd.f32 %v1935_v60, %v1887_v33  ;;  %v1937_v62 = vpop.f32.mrf.mxu1  ;;  %2081 = vmatmul.bf16.gmra.mxu0 %v4510_v51  ;;  %v1950_v51 = vadd.f32 %v1949_v36, %v4587_v40 }
 0x2f6   :  { %v1998_v48 = vpop.f32.mrf.mxu3  ;;  %v1959_v44 = vpop.f32.mrf.mxu2 }
 0x2f7   :  { %v2164_v58 = vmax.f32 %v1936_v56, 0.0  ;;  %v1999_v57 = vadd.f32 %v1998_v48, %v1950_v51  ;;  %v1960_v60 = vadd.f32 %v1959_v44, %v4587_v40  ;;  %v3551_v56 = vld [vmem:[#allocation14 + $0x28] sm:$0xff] }
 0x2f8   :  { %2508 = vmatpush.bf16.msrb.mxu0 %v3551_v56 }
 0x2fa   :  { %v1888_v39 = vpop.f32.mrf.mxu0 }
 0x2fb   :  { %v1889_v10 = vadd.f32 %v1888_v39, %v1840_v9 }
 0x2fd   :  { %v1938_v1 = vadd.f32 %v1937_v62, %v1889_v10  ;;  %v2096_v63 = vpop.f32.mrf.mxu1 }
 0x2fe   :  { %v2000_v38 = vpop.f32.mrf.mxu3  ;;  %v1961_v17 = vpop.f32.mrf.mxu2 }
 0x2ff   :  { %v2166_v0 = vmax.f32 %v1938_v1, 0.0  ;;  %v2001_v8 = vadd.f32 %v2000_v38, %v1952_v45  ;;  %v1962_v11 = vadd.f32 %v1961_v17, %v4587_v40 }
 0x301   :  { %v4589_v4 = vpack.c.bf16 %v2166_v0, %v2164_v58 }
 0x302   :  { %v2047_v20 = vpop.f32.mrf.mxu0 }
 0x303   :  { %2339 = vmatmul.bf16.gmra.mxu2 %v4551_v59  ;;  %v2048_v28 = vadd.f32 %v2047_v20, %v1999_v57 }
 0x305   :  { %v2098_v21 = vpop.f32.mrf.mxu1  ;;  %v2097_v18 = vadd.f32 %v2096_v63, %v2048_v28 }
 0x306   :  { %v2003_v16 = vpop.f32.mrf.mxu3  ;;  %v1964_v50 = vpop.f32.mrf.mxu2 }
 0x307   :  { %v2137_v12 = vmax.f32 %v2097_v18, 0.0  ;;  %v2004_v42 = vadd.f32 %v2003_v16, %v1955_v41  ;;  %v1965_v0 = vadd.f32 %v1964_v50, %v4587_v40  ;;  %v3550_v16 = vld [vmem:[#allocation14 + $0x20] sm:$0xff] }
 0x308   :  { %2509 = vmatpush.bf16.msrb.mxu0 %v3550_v16 }
 0x30a   :  { %v2049_v27 = vpop.f32.mrf.mxu0 }
 0x30b   :  { %v2050_v55 = vadd.f32 %v2049_v27, %v2001_v8 }
 0x30d   :  { %v2099_v2 = vadd.f32 %v2098_v21, %v2050_v55  ;;  %v2101_v6 = vpop.f32.mrf.mxu1 }
 0x30e   :  { %v2005_v54 = vpop.f32.mrf.mxu3  ;;  %v1966_v23 = vpop.f32.mrf.mxu2 }
 0x30f   :  { %v2139_v36 = vmax.f32 %v2099_v2, 0.0  ;;  %v2006_v47 = vadd.f32 %v2005_v54, %v1957_v22  ;;  %v1967_v21 = vadd.f32 %v1966_v23, %v4587_v40 }
 0x311   :  { %v2169_v59 = vpack.c.bf16 %v2139_v36, %v2137_v12 }
 0x312   :  { %v2052_v30 = vpop.f32.mrf.mxu0 }
 0x313   :  { %2344 = vmatmul.bf16.gmra.mxu2 %v4562_v35  ;;  %2373 = vmatmul.bf16.vlgmr.msrb.gmra.mxu3 %v2169_v59  ;;  %v2053_v3 = vadd.f32 %v2052_v30, %v2004_v42 }
 0x315   :  { %v2103_v49 = vpop.f32.mrf.mxu1  ;;  %v2102_v19 = vadd.f32 %v2101_v6, %v2053_v3 }
 0x316   :  { %v2008_v25 = vpop.f32.mrf.mxu3  ;;  %v1969_v7 = vpop.f32.mrf.mxu2 }
 0x317   :  { %v2141_v43 = vmax.f32 %v2102_v19, 0.0  ;;  %v2009_v53 = vadd.f32 %v2008_v25, %v1960_v60  ;;  %v1970_v50 = vadd.f32 %v1969_v7, %v4587_v40  ;;  %v3549_v25 = vld [vmem:[#allocation14 + $0x18] sm:$0xff] }
 0x318   :  { %2510 = vmatpush.bf16.msrb.mxu0 %v3549_v25 }
 0x31a   :  { %v2054_v29 = vpop.f32.mrf.mxu0 }
 0x31b   :  { %v2055_v37 = vadd.f32 %v2054_v29, %v2006_v47 }
 0x31d   :  { %v2104_v26 = vadd.f32 %v2103_v49, %v2055_v37  ;;  %v2106_v61 = vpop.f32.mrf.mxu1 }
 0x31e   :  { %v2010_v32 = vpop.f32.mrf.mxu3  ;;  %v1971_v1 = vpop.f32.mrf.mxu2 }
 0x31f   :  { %v2143_v46 = vmax.f32 %v2104_v26, 0.0  ;;  %v2011_v62 = vadd.f32 %v2010_v32, %v1962_v11  ;;  %v1972_v42 = vadd.f32 %v1971_v1, %v4587_v40 }
 0x321   :  { %v2171_v35 = vpack.c.bf16 %v2143_v46, %v2141_v43 }
 0x322   :  { %v2057_v14 = vpop.f32.mrf.mxu0 }
 0x323   :  { %2349 = vmatmul.bf16.gmra.mxu2 %v4571_v34  ;;  %2378 = vmatmul.bf16.gmra.mxu3 %v2171_v35  ;;  %v2058_v33 = vadd.f32 %v2057_v14, %v2009_v53  ;;  %v3548_v53 = vld [vmem:[#allocation14 + $0x10] sm:$0xff] }
 0x324   :  { %2511 = vmatpush.bf16.msrb.mxu0 %v3548_v53 }
 0x325   :  { %v2108_v24 = vpop.f32.mrf.mxu1  ;;  %v2107_v5 = vadd.f32 %v2106_v61, %v2058_v33 }
 0x326   :  { %v2013_v15 = vpop.f32.mrf.mxu3  ;;  %v1974_v45 = vpop.f32.mrf.mxu2 }
 0x327   :  { %v2145_v63 = vmax.f32 %v2107_v5, 0.0  ;;  %v2014_v20 = vadd.f32 %v2013_v15, %v1965_v0  ;;  %v1975_v43 = vadd.f32 %v1974_v45, %v4587_v40 }
 0x32a   :  { %v2059_v48 = vpop.f32.mrf.mxu0 }
 0x32b   :  { %v2060_v9 = vadd.f32 %v2059_v48, %v2011_v62 }
 0x32d   :  { %v2109_v39 = vadd.f32 %v2108_v24, %v2060_v9  ;;  %v2111_v10 = vpop.f32.mrf.mxu1 }
 0x32e   :  { %v2015_v44 = vpop.f32.mrf.mxu3  ;;  %v1976_v12 = vpop.f32.mrf.mxu2 }
 0x32f   :  { %v2147_v34 = vmax.f32 %v2109_v39, 0.0  ;;  %v2016_v28 = vadd.f32 %v2015_v44, %v1967_v21  ;;  %v1977_v60 = vadd.f32 %v1976_v12, %v4587_v40 }
 0x331   :  { %v2173_v38 = vpack.c.bf16 %v2147_v34, %v2145_v63  ;;  %v3547_v34 = vld [vmem:[#allocation14 + $0x8] sm:$0xff] }
 0x332   :  { %v2062_v58 = vpop.f32.mrf.mxu0  ;;  %2512 = vmatpush.bf16.msrb.mxu0 %v3547_v34 }
 0x333   :  { %2354 = vmatmul.bf16.gmra.mxu2 %v4580_v13  ;;  %2383 = vmatmul.bf16.gmra.mxu3 %v2173_v38  ;;  %v2063_v17 = vadd.f32 %v2062_v58, %v2014_v20 }
 0x335   :  { %v2113_v51 = vpop.f32.mrf.mxu1  ;;  %v2112_v8 = vadd.f32 %v2111_v10, %v2063_v17 }
 0x336   :  { %v2018_v57 = vpop.f32.mrf.mxu3  ;;  %v1979_v23 = vpop.f32.mrf.mxu2 }
 0x337   :  { %v2149_v6 = vmax.f32 %v2112_v8, 0.0  ;;  %v2019_v59 = vadd.f32 %v2018_v57, %v1970_v50  ;;  %v1980_v63 = vadd.f32 %v1979_v23, %v4587_v40 }
 0x33a   :  { %v2064_v31 = vpop.f32.mrf.mxu0 }
 0x33b   :  { %v2065_v27 = vadd.f32 %v2064_v31, %v2016_v28 }
 0x33d   :  { %v2114_v18 = vadd.f32 %v2113_v51, %v2065_v27  ;;  %v2116_v55 = vpop.f32.mrf.mxu1  ;;  %v3546_v27 = vld [vmem:[#allocation14] sm:$0xff] }
 0x33e   :  { %v2020_v2 = vpop.f32.mrf.mxu3  ;;  %v1981_v14 = vpop.f32.mrf.mxu2  ;;  %2513 = vmatpush.bf16.msrb.mxu0 %v3546_v27 }
 0x33f   :  { %v2151_v54 = vmax.f32 %v2114_v18, 0.0  ;;  %v2021_v22 = vadd.f32 %v2020_v2, %v1972_v42  ;;  %v1982_v58 = vadd.f32 %v1981_v14, %v4587_v40 }
 0x341   :  { %v2175_v13 = vpack.c.bf16 %v2151_v54, %v2149_v6 }
 0x342   :  { %v2067_v36 = vpop.f32.mrf.mxu0 }
 0x343   :  { %2359 = vmatmul.bf16.gmra.mxu2 %v4589_v4  ;;  %2388 = vmatmul.bf16.gmra.mxu3 %v2175_v13  ;;  %v2068_v49 = vadd.f32 %v2067_v36, %v2019_v59 }
 0x345   :  { %v2118_v30 = vpop.f32.mrf.mxu1  ;;  %v2117_v52 = vadd.f32 %v2116_v55, %v2068_v49 }
 0x346   :  { %v2023_v41 = vpop.f32.mrf.mxu3  ;;  %v1984_v39 = vpop.f32.mrf.mxu2 }
 0x347   :  { %v2153_v26 = vmax.f32 %v2117_v52, 0.0  ;;  %v2024_v46 = vadd.f32 %v2023_v41, %v1975_v43  ;;  %v1985_v6 = vadd.f32 %v1984_v39, %v4587_v40 }
 0x34a   :  { %v2069_v3 = vpop.f32.mrf.mxu0 }
 0x34b   :  { %v2070_v47 = vadd.f32 %v2069_v3, %v2021_v22 }
 0x34d   :  { %v2119_v29 = vadd.f32 %v2118_v30, %v2070_v47  ;;  %v2121_v19 = vpop.f32.mrf.mxu1 }
 0x34e   :  { %v2025_v37 = vpop.f32.mrf.mxu3  ;;  %v1986_v57 = vpop.f32.mrf.mxu2 }
 0x34f   :  { %v2155_v61 = vmax.f32 %v2119_v29, 0.0  ;;  %v2026_v15 = vadd.f32 %v2025_v37, %v1977_v60  ;;  %v1987_v36 = vadd.f32 %v1986_v57, %v4587_v40  ;;  %v4615_v37 = vld [vmem:[%s4668_s8] ss:$0 sm:$0xff] }
 0x351   :  { %v2177_v4 = vpack.c.bf16 %v2155_v61, %v2153_v26 }
 0x352   :  { %v2072_v32 = vpop.f32.mrf.mxu0 }
 0x353   :  { %2393 = vmatmul.bf16.gmra.mxu3 %v2177_v4  ;;  %v2073_v7 = vadd.f32 %v2072_v32, %v2024_v46 }
 0x355   :  { %v2123_v35 = vpop.f32.mrf.mxu1  ;;  %v2122_v33 = vadd.f32 %v2121_v19, %v2073_v7 }
 0x356   :  { %v2028_v24 = vpop.f32.mrf.mxu3  ;;  %v2325_v54 = vpop.f32.mrf.mxu2 }
 0x357   :  { %v2157_v5 = vmax.f32 %v2122_v33, 0.0  ;;  %v2029_v38 = vadd.f32 %v2028_v24, %v1980_v63  ;;  %v2326_v40 = vadd.f32 %v4615_v37, %v2325_v54 }
 0x35a   :  { %v2074_v11 = vpop.f32.mrf.mxu0 }
 0x35b   :  { %v2075_v56 = vadd.f32 %v2074_v11, %v2026_v15 }
 0x35d   :  { %v2124_v62 = vadd.f32 %v2123_v35, %v2075_v56  ;;  %v2126_v48 = vpop.f32.mrf.mxu1 }
 0x35e   :  { %v2030_v1 = vpop.f32.mrf.mxu3  ;;  %v2327_v22 = vpop.f32.mrf.mxu2 }
 0x35f   :  { %v2159_v9 = vmax.f32 %v2124_v62, 0.0  ;;  %v2031_v51 = vadd.f32 %v2030_v1, %v1982_v58  ;;  %v2328_v61 = vadd.f32 %v4615_v37, %v2327_v22 }
 0x361   :  { %v2179_v10 = vpack.c.bf16 %v2159_v9, %v2157_v5 }
 0x362   :  { %v2077_v44 = vpop.f32.mrf.mxu0 }
 0x363   :  { %2398 = vmatmul.bf16.gmra.mxu3 %v2179_v10  ;;  %v2078_v0 = vadd.f32 %v2077_v44, %v2029_v38 }
 0x365   :  { %v2128_v20 = vpop.f32.mrf.mxu1  ;;  %v2127_v17 = vadd.f32 %v2126_v48, %v2078_v0 }
 0x366   :  { %v2033_v45 = vpop.f32.mrf.mxu3  ;;  %v2330_v23 = vpop.f32.mrf.mxu2 }
 0x367   :  { %v2161_v31 = vmax.f32 %v2127_v17, 0.0  ;;  %v2034_v13 = vadd.f32 %v2033_v45, %v1985_v6  ;;  %v2331_v53 = vadd.f32 %v4615_v37, %v2330_v23 }
 0x36a   :  { %v2079_v21 = vpop.f32.mrf.mxu0 }
 0x36b   :  { %v2080_v16 = vadd.f32 %v2079_v21, %v2031_v51 }
 0x36d   :  { %v2129_v28 = vadd.f32 %v2128_v20, %v2080_v16  ;;  %v2131_v55 = vpop.f32.mrf.mxu1 }
 0x36e   :  { %v2035_v12 = vpop.f32.mrf.mxu3  ;;  %v2332_v29 = vpop.f32.mrf.mxu2 }
 0x36f   :  { %v2163_v8 = vmax.f32 %v2129_v28, 0.0  ;;  %v2036_v59 = vadd.f32 %v2035_v12, %v1987_v36  ;;  %v2333_v24 = vadd.f32 %v4615_v37, %v2332_v29 }
 0x371   :  { %v2181_v18 = vpack.c.bf16 %v2163_v8, %v2161_v31 }
 0x372   :  { %v2082_v2 = vpop.f32.mrf.mxu0 }
 0x373   :  { %2403 = vmatmul.bf16.gmra.mxu3 %v2181_v18  ;;  %v2083_v50 = vadd.f32 %v2082_v2, %v2034_v13 }
 0x375   :  { %v2132_v41 = vadd.f32 %v2131_v55, %v2083_v50  ;;  %v2133_v49 = vpop.f32.mrf.mxu1 }
 0x376   :  { %v2335_v26 = vpop.f32.mrf.mxu2 }
 0x377   :  { %v2165_v3 = vmax.f32 %v2132_v41, 0.0  ;;  %v2336_v10 = vadd.f32 %v4615_v37, %v2335_v26 }
 0x37a   :  { %v2084_v30 = vpop.f32.mrf.mxu0 }
 0x37b   :  { %v2085_v42 = vadd.f32 %v2084_v30, %v2036_v59 }
 0x37d   :  { %v2134_v25 = vadd.f32 %v2133_v49, %v2085_v42 }
 0x37e   :  { %v2337_v60 = vpop.f32.mrf.mxu2 }
 0x37f   :  { %v2167_v52 = vmax.f32 %v2134_v25, 0.0  ;;  %v2338_v1 = vadd.f32 %v4615_v37, %v2337_v60 }
 0x381   :  { %v2183_v47 = vpack.c.bf16 %v2167_v52, %v2165_v3 }
 0x383   :  { %2408 = vmatmul.bf16.gmra.mxu3 %v2183_v47 }
 0x386   :  { %v2340_v56 = vpop.f32.mrf.mxu2 }
 0x387   :  { %v2341_v57 = vadd.f32 %v4615_v37, %v2340_v56 }
 0x38e   :  { %v2342_v39 = vpop.f32.mrf.mxu2 }
 0x38f   :  { %v2343_v21 = vadd.f32 %v4615_v37, %v2342_v39 }
 0x396   :  { %v2374_v19 = vpop.f32.mrf.mxu3  ;;  %v2345_v20 = vpop.f32.mrf.mxu2 }
 0x397   :  { %v2375_v4 = vadd.f32 %v2374_v19, %v2326_v40  ;;  %v2346_v2 = vadd.f32 %v4615_v37, %v2345_v20 }
 0x399   :  { %v2414_v46 = vmax.f32 %v2375_v4, 0.0 }
 0x39e   :  { %v2376_v32 = vpop.f32.mrf.mxu3  ;;  %v2347_v16 = vpop.f32.mrf.mxu2 }
 0x39f   :  { %v2377_v43 = vadd.f32 %v2376_v32, %v2328_v61  ;;  %v2348_v6 = vadd.f32 %v4615_v37, %v2347_v16 }
 0x3a1   :  { %v2415_v35 = vmax.f32 %v2377_v43, 0.0 }
 0x3a3   :  { %v2430_v14 = vpack.c.bf16 %v2415_v35, %v2414_v46 }
 0x3a5   :  { %2514 = vmatmul.bf16.vlgmr.msrb.gmra.mxu0 %v2430_v14 }
 0x3a6   :  { %v2379_v7 = vpop.f32.mrf.mxu3  ;;  %v2350_v55 = vpop.f32.mrf.mxu2 }
 0x3a7   :  { %v2380_v15 = vadd.f32 %v2379_v7, %v2331_v53  ;;  %v2351_v42 = vadd.f32 %v4615_v37, %v2350_v55 }
 0x3a9   :  { %v2416_v62 = vmax.f32 %v2380_v15, 0.0 }
 0x3ae   :  { %v2381_v11 = vpop.f32.mrf.mxu3  ;;  %v2352_v59 = vpop.f32.mrf.mxu2 }
 0x3af   :  { %v2382_v33 = vadd.f32 %v2381_v11, %v2333_v24  ;;  %v2353_v25 = vadd.f32 %v4615_v37, %v2352_v59 }
 0x3b1   :  { %v2417_v48 = vmax.f32 %v2382_v33, 0.0 }
 0x3b3   :  { %v2431_v5 = vpack.c.bf16 %v2417_v48, %v2416_v62 }
 0x3b5   :  { %2519 = vmatmul.bf16.gmra.mxu0 %v2431_v5 }
 0x3b6   :  { %v2384_v9 = vpop.f32.mrf.mxu3  ;;  %v2355_v49 = vpop.f32.mrf.mxu2 }
 0x3b7   :  { %v2385_v44 = vadd.f32 %v2384_v9, %v2336_v10  ;;  %v2356_v26 = vadd.f32 %v4615_v37, %v2355_v49  ;;  %v4636_v9 = vld [vmem:[%s4670_s10] ss:$0 sm:$0xff]  ;;  %s3901_s10 = smov [#allocation16]  }
 0x3b8   :  { %s2655_s21 = sshll.u32 %s3901_s10, 4  ;;  %s2656_s21 = int_to_ptr.vmem [resolvable:$true] %s2655_s21 }
 0x3b9   :  { %v2418_v38 = vmax.f32 %v2385_v44, 0.0 }
 0x3be   :  { %v2386_v63 = vpop.f32.mrf.mxu3  ;;  %v2357_v19 = vpop.f32.mrf.mxu2 }
 0x3bf   :  { %v2387_v34 = vadd.f32 %v2386_v63, %v2338_v1  ;;  %v2358_v61 = vadd.f32 %v4615_v37, %v2357_v19 }
 0x3c1   :  { %v2419_v58 = vmax.f32 %v2387_v34, 0.0 }
 0x3c3   :  { %v2432_v0 = vpack.c.bf16 %v2419_v58, %v2418_v38 }
 0x3c5   :  { %2524 = vmatmul.bf16.gmra.mxu0 %v2432_v0 }
 0x3c6   :  { %v2389_v51 = vpop.f32.mrf.mxu3  ;;  %v2360_v46 = vpop.f32.mrf.mxu2 }
 0x3c7   :  { %v2390_v17 = vadd.f32 %v2389_v51, %v2341_v57  ;;  %v2361_v24 = vadd.f32 %v4615_v37, %v2360_v46 }
 0x3c9   :  { %v2420_v31 = vmax.f32 %v2390_v17, 0.0 }
 0x3ce   :  { %v2391_v45 = vpop.f32.mrf.mxu3  ;;  %v2362_v53 = vpop.f32.mrf.mxu2 }
 0x3cf   :  { %v2392_v28 = vadd.f32 %v2391_v45, %v2343_v21  ;;  %v2363_v15 = vadd.f32 %v4615_v37, %v2362_v53 }
 0x3d1   :  { %v2421_v8 = vmax.f32 %v2392_v28, 0.0 }
 0x3d3   :  { %v2433_v27 = vpack.c.bf16 %v2421_v8, %v2420_v31 }
 0x3d5   :  { %2529 = vmatmul.bf16.gmra.mxu0 %v2433_v27 }
 0x3d6   :  { %v2394_v18 = vpop.f32.mrf.mxu3 }
 0x3d7   :  { %v2395_v54 = vadd.f32 %v2394_v18, %v2346_v2 }
 0x3d9   :  { %v2422_v36 = vmax.f32 %v2395_v54, 0.0 }
 0x3de   :  { %v2396_v13 = vpop.f32.mrf.mxu3 }
 0x3df   :  { %v2397_v12 = vadd.f32 %v2396_v13, %v2348_v6 }
 0x3e1   :  { %v2423_v50 = vmax.f32 %v2397_v12, 0.0 }
 0x3e3   :  { %v2434_v30 = vpack.c.bf16 %v2423_v50, %v2422_v36 }
 0x3e5   :  { %2534 = vmatmul.bf16.gmra.mxu0 %v2434_v30 }
 0x3e6   :  { %v2399_v41 = vpop.f32.mrf.mxu3 }
 0x3e7   :  { %v2400_v22 = vadd.f32 %v2399_v41, %v2351_v42 }
 0x3e9   :  { %v2424_v47 = vmax.f32 %v2400_v22, 0.0 }
 0x3ee   :  { %v2401_v3 = vpop.f32.mrf.mxu3 }
 0x3ef   :  { %v2402_v52 = vadd.f32 %v2401_v3, %v2353_v25 }
 0x3f1   :  { %v2425_v23 = vmax.f32 %v2402_v52, 0.0 }
 0x3f3   :  { %v2435_v29 = vpack.c.bf16 %v2425_v23, %v2424_v47 }
 0x3f5   :  { %2539 = vmatmul.bf16.gmra.mxu0 %v2435_v29 }
 0x3f6   :  { %v2404_v40 = vpop.f32.mrf.mxu3 }
 0x3f7   :  { %v2405_v4 = vadd.f32 %v2404_v40, %v2356_v26 }
 0x3f9   :  { %v2426_v35 = vmax.f32 %v2405_v4, 0.0 }
 0x3fe   :  { %v2406_v32 = vpop.f32.mrf.mxu3 }
 0x3ff   :  { %v2407_v43 = vadd.f32 %v2406_v32, %v2358_v61 }
 0x401   :  { %v2427_v14 = vmax.f32 %v2407_v43, 0.0 }
 0x403   :  { %v2436_v60 = vpack.c.bf16 %v2427_v14, %v2426_v35 }
 0x405   :  { %2544 = vmatmul.bf16.gmra.mxu0 %v2436_v60 }
 0x406   :  { %v2409_v7 = vpop.f32.mrf.mxu3 }
 0x407   :  { %v2410_v11 = vadd.f32 %v2409_v7, %v2361_v24 }
 0x409   :  { %v2428_v62 = vmax.f32 %v2410_v11, 0.0 }
 0x40e   :  { %v2411_v33 = vpop.f32.mrf.mxu3 }
 0x40f   :  { %v2412_v56 = vadd.f32 %v2411_v33, %v2363_v15 }
 0x411   :  { %v2429_v48 = vmax.f32 %v2412_v56, 0.0 }
 0x413   :  { %v2437_v5 = vpack.c.bf16 %v2429_v48, %v2428_v62 }
 0x415   :  { %2549 = vmatmul.bf16.gmra.mxu0 %v2437_v5 }
 0x422   :  { %v2515_v39 = vpop.f32.mrf.mxu0 }
 0x423   :  { %v2516_v10 = vadd.f32 %v4636_v9, %v2515_v39 }
 0x425   :  { %v2555_v1 = vsub.f32 0.0, %v2516_v10 }
 0x427   :  { %v2571_v44 = vmul.f32 1.442695, %v2555_v1 }
 0x429   :  { %3595 = vpow2.f32 %v2571_v44 }
 0x42a   :  { %v2517_v63 = vpop.f32.mrf.mxu0 }
 0x42b   :  { %v2518_v37 = vadd.f32 %v4636_v9, %v2517_v63 }
 0x42d   :  { %v2556_v34 = vsub.f32 0.0, %v2518_v37 }
 0x42f   :  { %v3596_v38 = vpop.eup %3595  ;;  %v2573_v58 = vmul.f32 1.442695, %v2556_v34 }
 0x430   :  { %v2603_v0 = vadd.f32 1.0, %v3596_v38 }
 0x431   :  { %3597 = vpow2.f32 %v2573_v58 }
 0x432   :  { %3599 = vrcp.f32 %v2603_v0  ;;  %v2520_v20 = vpop.f32.mrf.mxu0 }
 0x433   :  { %v2521_v51 = vadd.f32 %v4636_v9, %v2520_v20 }
 0x435   :  { %v2557_v57 = vsub.f32 0.0, %v2521_v51 }
 0x437   :  { %v3598_v21 = vpop.eup %3597  ;;  %v2575_v17 = vmul.f32 1.442695, %v2557_v57 }
 0x438   :  { %v3600_v16 = vpop.eup %3599  ;;  %v2604_v45 = vadd.f32 1.0, %v3598_v21 }
 0x439   :  { %2635 = vst [vmem:[#allocation16] sm:$0xff] %v3600_v16  ;;  %3601 = vpow2.f32 %v2575_v17 }
 0x43a   :  { %3603 = vrcp.f32 %v2604_v45  ;;  %v2522_v28 = vpop.f32.mrf.mxu0 }
 0x43b   :  { %v2523_v31 = vadd.f32 %v4636_v9, %v2522_v28 }
 0x43d   :  { %v2558_v8 = vsub.f32 0.0, %v2523_v31 }
 0x43f   :  { %v3602_v27 = vpop.eup %3601  ;;  %v2577_v18 = vmul.f32 1.442695, %v2558_v8 }
 0x440   :  { %v3604_v55 = vpop.eup %3603  ;;  %v2605_v2 = vadd.f32 1.0, %v3602_v27 }
 0x441   :  { %2636 = vst [vmem:[#allocation16 + $0x8] sm:$0xff] %v3604_v55  ;;  %3605 = vpow2.f32 %v2577_v18 }
 0x442   :  { %3607 = vrcp.f32 %v2605_v2  ;;  %v2525_v6 = vpop.f32.mrf.mxu0 }
 0x443   :  { %v2526_v54 = vadd.f32 %v4636_v9, %v2525_v6 }
 0x445   :  { %v2559_v13 = vsub.f32 0.0, %v2526_v54 }
 0x447   :  { %v3606_v12 = vpop.eup %3605  ;;  %v2579_v36 = vmul.f32 1.442695, %v2559_v13 }
 0x448   :  { %v3608_v50 = vpop.eup %3607  ;;  %v2606_v59 = vadd.f32 1.0, %v3606_v12 }
 0x449   :  { %2637 = vst [vmem:[#allocation16 + $0x10] sm:$0xff] %v3608_v50  ;;  %3609 = vpow2.f32 %v2579_v36 }
 0x44a   :  { %3611 = vrcp.f32 %v2606_v59  ;;  %v2527_v30 = vpop.f32.mrf.mxu0 }
 0x44b   :  { %v2528_v41 = vadd.f32 %v4636_v9, %v2527_v30 }
 0x44d   :  { %v2560_v42 = vsub.f32 0.0, %v2528_v41 }
 0x44f   :  { %v3610_v49 = vpop.eup %3609  ;;  %v2581_v25 = vmul.f32 1.442695, %v2560_v42 }
 0x450   :  { %v3612_v22 = vpop.eup %3611  ;;  %v2607_v3 = vadd.f32 1.0, %v3610_v49 }
 0x451   :  { %2638 = vst [vmem:[#allocation16 + $0x18] sm:$0xff] %v3612_v22  ;;  %3613 = vpow2.f32 %v2581_v25 }
 0x452   :  { %3615 = vrcp.f32 %v2607_v3  ;;  %v2530_v52 = vpop.f32.mrf.mxu0 }
 0x453   :  { %v2531_v47 = vadd.f32 %v4636_v9, %v2530_v52 }
 0x455   :  { %v2561_v23 = vsub.f32 0.0, %v2531_v47 }
 0x457   :  { %v3614_v29 = vpop.eup %3613  ;;  %v2583_v19 = vmul.f32 1.442695, %v2561_v23 }
 0x458   :  { %v3616_v40 = vpop.eup %3615  ;;  %v2608_v26 = vadd.f32 1.0, %v3614_v29 }
 0x459   :  { %2639 = vst [vmem:[#allocation16 + $0x20] sm:$0xff] %v3616_v40  ;;  %3617 = vpow2.f32 %v2583_v19 }
 0x45a   :  { %3619 = vrcp.f32 %v2608_v26  ;;  %v2532_v61 = vpop.f32.mrf.mxu0 }
 0x45b   :  { %v2533_v4 = vadd.f32 %v4636_v9, %v2532_v61 }
 0x45d   :  { %v2562_v32 = vsub.f32 0.0, %v2533_v4 }
 0x45f   :  { %v3618_v43 = vpop.eup %3617  ;;  %v2585_v46 = vmul.f32 1.442695, %v2562_v32 }
 0x460   :  { %v3620_v35 = vpop.eup %3619  ;;  %v2609_v14 = vadd.f32 1.0, %v3618_v43 }
 0x461   :  { %2640 = vst [vmem:[#allocation16 + $0x28] sm:$0xff] %v3620_v35  ;;  %3621 = vpow2.f32 %v2585_v46 }
 0x462   :  { %3623 = vrcp.f32 %v2609_v14  ;;  %v2535_v60 = vpop.f32.mrf.mxu0 }
 0x463   :  { %v2536_v7 = vadd.f32 %v4636_v9, %v2535_v60 }
 0x465   :  { %v2563_v53 = vsub.f32 0.0, %v2536_v7 }
 0x467   :  { %v3622_v24 = vpop.eup %3621  ;;  %v2587_v15 = vmul.f32 1.442695, %v2563_v53 }
 0x468   :  { %v3624_v11 = vpop.eup %3623  ;;  %v2610_v33 = vadd.f32 1.0, %v3622_v24 }
 0x469   :  { %2641 = vst [vmem:[#allocation16 + $0x30] sm:$0xff] %v3624_v11  ;;  %3625 = vpow2.f32 %v2587_v15 }
 0x46a   :  { %3627 = vrcp.f32 %v2610_v33  ;;  %v2537_v56 = vpop.f32.mrf.mxu0 }
 0x46b   :  { %v2538_v62 = vadd.f32 %v4636_v9, %v2537_v56 }
 0x46d   :  { %v2564_v48 = vsub.f32 0.0, %v2538_v62 }
 0x46f   :  { %v3626_v5 = vpop.eup %3625  ;;  %v2589_v39 = vmul.f32 1.442695, %v2564_v48 }
 0x470   :  { %v3628_v10 = vpop.eup %3627  ;;  %v2611_v1 = vadd.f32 1.0, %v3626_v5 }
 0x471   :  { %2642 = vst [vmem:[#allocation16 + $0x38] sm:$0xff] %v3628_v10  ;;  %3629 = vpow2.f32 %v2589_v39 }
 0x472   :  { %3631 = vrcp.f32 %v2611_v1  ;;  %v2540_v44 = vpop.f32.mrf.mxu0 }
 0x473   :  { %v2541_v63 = vadd.f32 %v4636_v9, %v2540_v44 }
 0x475   :  { %v2565_v37 = vsub.f32 0.0, %v2541_v63 }
 0x477   :  { %v3630_v34 = vpop.eup %3629  ;;  %v2591_v38 = vmul.f32 1.442695, %v2565_v37 }
 0x478   :  { %v3632_v58 = vpop.eup %3631  ;;  %v2612_v0 = vadd.f32 1.0, %v3630_v34 }
 0x479   :  { %2643 = vst [vmem:[#allocation16 + $0x40] sm:$0xff] %v3632_v58  ;;  %3633 = vpow2.f32 %v2591_v38 }
 0x47a   :  { %3635 = vrcp.f32 %v2612_v0  ;;  %v2542_v20 = vpop.f32.mrf.mxu0 }
 0x47b   :  { %v2543_v51 = vadd.f32 %v4636_v9, %v2542_v20 }
 0x47d   :  { %v2566_v57 = vsub.f32 0.0, %v2543_v51 }
 0x47f   :  { %v3634_v21 = vpop.eup %3633  ;;  %v2593_v17 = vmul.f32 1.442695, %v2566_v57 }
 0x480   :  { %v3636_v16 = vpop.eup %3635  ;;  %v2613_v45 = vadd.f32 1.0, %v3634_v21 }
 0x481   :  { %2644 = vst [vmem:[#allocation16 + $0x48] sm:$0xff] %v3636_v16  ;;  %3637 = vpow2.f32 %v2593_v17 }
 0x482   :  { %3639 = vrcp.f32 %v2613_v45  ;;  %v2545_v28 = vpop.f32.mrf.mxu0 }
 0x483   :  { %v2546_v31 = vadd.f32 %v4636_v9, %v2545_v28 }
 0x485   :  { %v2567_v8 = vsub.f32 0.0, %v2546_v31 }
 0x487   :  { %v3638_v27 = vpop.eup %3637  ;;  %v2595_v18 = vmul.f32 1.442695, %v2567_v8 }
 0x488   :  { %v3640_v55 = vpop.eup %3639  ;;  %v2614_v2 = vadd.f32 1.0, %v3638_v27 }
 0x489   :  { %2645 = vst [vmem:[#allocation16 + $0x50] sm:$0xff] %v3640_v55  ;;  %3641 = vpow2.f32 %v2595_v18 }
 0x48a   :  { %3643 = vrcp.f32 %v2614_v2  ;;  %v2547_v6 = vpop.f32.mrf.mxu0 }
 0x48b   :  { %v2548_v54 = vadd.f32 %v4636_v9, %v2547_v6 }
 0x48d   :  { %v2568_v13 = vsub.f32 0.0, %v2548_v54 }
 0x48f   :  { %v3642_v12 = vpop.eup %3641  ;;  %v2597_v36 = vmul.f32 1.442695, %v2568_v13 }
 0x490   :  { %v3644_v50 = vpop.eup %3643  ;;  %v2615_v59 = vadd.f32 1.0, %v3642_v12 }
 0x491   :  { %2646 = vst [vmem:[#allocation16 + $0x58] sm:$0xff] %v3644_v50  ;;  %3645 = vpow2.f32 %v2597_v36 }
 0x492   :  { %3647 = vrcp.f32 %v2615_v59  ;;  %v2550_v30 = vpop.f32.mrf.mxu0 }
 0x493   :  { %v2551_v41 = vadd.f32 %v4636_v9, %v2550_v30 }
 0x495   :  { %v2569_v42 = vsub.f32 0.0, %v2551_v41 }
 0x497   :  { %v3646_v49 = vpop.eup %3645  ;;  %v2599_v25 = vmul.f32 1.442695, %v2569_v42 }
 0x498   :  { %v3648_v22 = vpop.eup %3647  ;;  %v2616_v3 = vadd.f32 1.0, %v3646_v49 }
 0x499   :  { %2647 = vst [vmem:[#allocation16 + $0x60] sm:$0xff] %v3648_v22  ;;  %3649 = vpow2.f32 %v2599_v25 }
 0x49a   :  { %3651 = vrcp.f32 %v2616_v3  ;;  %v2552_v52 = vpop.f32.mrf.mxu0 }
 0x49b   :  { %v2553_v47 = vadd.f32 %v4636_v9, %v2552_v52 }
 0x49d   :  { %v2570_v23 = vsub.f32 0.0, %v2553_v47 }
 0x49f   :  { %v3650_v29 = vpop.eup %3649  ;;  %v2601_v19 = vmul.f32 1.442695, %v2570_v23 }
 0x4a0   :  { %v3652_v40 = vpop.eup %3651  ;;  %v2617_v26 = vadd.f32 1.0, %v3650_v29 }
 0x4a1   :  { %2648 = vst [vmem:[#allocation16 + $0x68] sm:$0xff] %v3652_v40  ;;  %3653 = vpow2.f32 %v2601_v19 }
 0x4a2   :  { %3655 = vrcp.f32 %v2617_v26 }
 0x4a7   :  { %v3654_v61 = vpop.eup %3653 }
 0x4a8   :  { %v3656_v4 = vpop.eup %3655  ;;  %v2618_v32 = vadd.f32 1.0, %v3654_v61 }
 0x4a9   :  { %2649 = vst [vmem:[#allocation16 + $0x70] sm:$0xff] %v3656_v4 }
 0x4aa   :  { %3657 = vrcp.f32 %v2618_v32 }
 0x4b0   :  { %v3658_v9 = vpop.eup %3657 }
 0x4b1   :  { %2650 = vst [vmem:[#allocation16 + $0x78] sm:$0xff] %v3658_v9 }
 0x4b2   :  { %2663 = dma.vmem_to_hbm [thread:$0]  %s2656_s21, 2048, %s2658_s23, [#allocation4], %s3888_s25, %s3888_s25, %s3889_s26  }
 0x4b3   :  { %3885 = dma.done.wait [#allocation4], 2048  }
 0x4b4   :  { %3886 = vsyncadd [#allocation4], 4294965248 }
 0x4b5   :  { %2668 = vsyncpa [#allocation3], 1 }
 0x4b6   :  { %2669 = vsyncpa [#allocation6], 1 }
 0x4b7   :  { %2670 = vsyncpa [#allocation9], 1 }
 0x4b8   :  { %2671 = vsyncpa [#allocation12], 1 }
 0x4b9   :  { %2672 = vsyncpa [#allocation15], 1 }
 0x4ba   :  { %2673 = vsyncpa [#allocation4], 1 }

</bundles_post_ra>
